<compile_context>
chip_gen: v7x
topology: tpu7x:2x2x1
jax: 0.10.0
libtpu: 0.0.40
codegen_flags: <defaults>
</compile_context>

<pallas_src>
import functools

import jax
import jax.numpy as jnp
import numpy as np
from jax.experimental import pallas as pl
from jax.experimental.pallas import tpu as pltpu


def _meta_part_kernel(kv_ref, me_ref, wq_ref, bq_ref, g1_ref, b1_ref,
                      g2_ref, b2_ref, out_ref, *, iters, alpha):
    """kv_ref: (b, d, n) channel-major view of x;  me_ref: (m, d);  out: (b, m, d)."""
    eps_bn = 1e-5          # PyTorch BatchNorm1d default eps
    eps = 1e-12            # module's self.eps

    b, d, n = kv_ref.shape
    m = me_ref.shape[0]

    # k == v == inputs (to_k = Identity), kept per-batch in (d, n) layout.
    kv = [kv_ref[bi].astype(jnp.float32) for bi in range(b)]        # b x (d, n)

    me = me_ref[...].astype(jnp.float32)                            # (m, d)
    wq = wq_ref[...]                                                # (d, d) = W^T
    bq = bq_ref[...]                                                # (1, d)
    g1 = g1_ref[...]                                                # (1, d)
    b1 = b1_ref[...]                                                # (1, d)
    g2 = g2_ref[...]                                                # (m, 1)
    b2 = b2_ref[...]                                                # (m, 1)

    inv_m = 1.0 / m
    inv_bm = 1.0 / (b * m)
    inv_bn = 1.0 / (b * n)

    def linear(xmat):                                               # (rows, d)
        return jnp.dot(xmat, wq, preferred_element_type=jnp.float32) + bq

    def bn_relu_rows(ys, inv_rows):
        """BatchNorm1d(dim) (batch stats, biased var) over the concatenation of
        the row-blocks in `ys`, affine folded into one multiply-add, then ReLU."""
        mu = sum(jnp.sum(y, axis=0, keepdims=True) for y in ys) * inv_rows
        ex2 = sum(jnp.sum(y * y, axis=0, keepdims=True) for y in ys) * inv_rows
        s = jax.lax.rsqrt(ex2 - mu * mu + eps_bn) * g1
        t = b1 - mu * s
        return [jnp.maximum(y * s + t, 0.0) for y in ys]

    slots = [me] * b
    new_slots = None

    for it in range(iters):
        # ---- to_q: Linear(dim,dim) -> BN(dim, batch stats) -> ReLU ----------
        if it == 0:
            # Initial slots are identical across the batch, so the (b*m, d)
            # Linear+BN collapses exactly to one (m, d) pass + broadcast.
            q0 = bn_relu_rows([linear(me)], inv_m)[0]
            q = [q0] * b
        else:
            slots = [new_slots[bi] * alpha + slots[bi] * (1.0 - alpha)
                     for bi in range(b)]
            q = bn_relu_rows([linear(s) for s in slots], inv_bm)

        # ---- attn = einsum('bid,bjd->bij')  ==  q_b (m,d) @ kv_b (d,n) ------
        attn = [jnp.dot(q[bi], kv[bi], preferred_element_type=jnp.float32)
                for bi in range(b)]                                  # b x (m, n)

        # ---- mask_norm: BN(embed_num) over (batch, n) per channel m + ReLU --
        mu2 = sum(jnp.sum(a, axis=1, keepdims=True) for a in attn) * inv_bn
        ex2 = sum(jnp.sum(a * a, axis=1, keepdims=True) for a in attn) * inv_bn
        s2 = jax.lax.rsqrt(ex2 - mu2 * mu2 + eps_bn) * g2
        t2 = b2 - mu2 * s2
        attn = [jnp.maximum(a * s2 + t2, 0.0) for a in attn]

        # ---- new_slots = (attn @ v) / (attn.sum(-1) + eps) ------------------
        new_slots = []
        for bi in range(b):
            num = jax.lax.dot_general(                               # (m, d)
                attn[bi], kv[bi], (((1,), (1,)), ((), ())),
                preferred_element_type=jnp.float32)
            denom = jnp.sum(attn[bi], axis=1, keepdims=True) + eps   # (m, 1)
            # EUP approx reciprocal + one Newton step (keeps full f32 accuracy
            # while keeping the exact-divide off the VPU path).
            r = pl.reciprocal(denom, approx=True)
            r = r * (2.0 - denom * r)
            new_slots.append(num * r)

    for bi in range(b):
        out_ref[bi] = new_slots[bi].astype(out_ref.dtype)


def meta_part_forward(x, meta_embed, wq_t, bq, g1, b1, g2, b2,
                      *, iters=3, alpha=0.1):
    """x: (b, c, h, w) NCHW.  Returns new_slots of shape (b, embed_num, c)."""
    b, c, h, w = x.shape
    d, n = c, h * w
    m = meta_embed.shape[0]

    # Free reshape (bitcast) of the contiguous NCHW tensor -> (b, d, n).
    # No HBM transpose: the kernel consumes the channel-major layout directly.
    kv = x.reshape(b, c, n)

    kernel = functools.partial(_meta_part_kernel, iters=iters, alpha=alpha)
    vmem = pl.BlockSpec(memory_space=pltpu.MemorySpace.VMEM)

    return pl.pallas_call(
        kernel,
        out_shape=jax.ShapeDtypeStruct((b, m, d), jnp.float32),
        in_specs=[vmem] * 8,
        out_specs=vmem,
    )(kv.astype(jnp.float32),
      meta_embed.astype(jnp.float32),
      wq_t.astype(jnp.float32),
      bq.reshape(1, d).astype(jnp.float32),
      g1.reshape(1, d).astype(jnp.float32),
      b1.reshape(1, d).astype(jnp.float32),
      g2.reshape(m, 1).astype(jnp.float32),
      b2.reshape(m, 1).astype(jnp.float32))


def meta_part_reference(x, meta_embed, wq_t, bq, g1, b1, g2, b2,
                        *, iters=3, alpha=0.1):
    """Pure-JAX reference mirroring the PyTorch forward (training-mode BN)."""
    eps_bn, eps = 1e-5, 1e-12
    b, c, h, w = x.shape
    d = c
    m = meta_embed.shape[0]
    inputs = jnp.transpose(x.reshape(b, c, -1), (0, 2, 1)).astype(jnp.float32)
    k = inputs
    v = inputs
    slots = jnp.broadcast_to(meta_embed[None], (b, m, d)).astype(jnp.float32)
    new_slots = None
    for _ in range(iters):
        if new_slots is not None:
            slots = new_slots * alpha + slots * (1.0 - alpha)
        flat = slots.reshape(b * m, d)
        y = flat @ wq_t + bq[None]
        mu1 = jnp.mean(y, axis=0, keepdims=True)
        var1 = jnp.mean((y - mu1) ** 2, axis=0, keepdims=True)
        y = (y - mu1) / jnp.sqrt(var1 + eps_bn) * g1[None] + b1[None]
        q = jnp.maximum(y, 0.0).reshape(b, m, d)
        attn = jnp.einsum('bid,bjd->bij', q, k)
        mu2 = jnp.mean(attn, axis=(0, 2), keepdims=True)
        var2 = jnp.mean((attn - mu2) ** 2, axis=(0, 2), keepdims=True)
        attn = (attn - mu2) / jnp.sqrt(var2 + eps_bn) * g2[None, :, None] \
               + b2[None, :, None]
        attn = jnp.maximum(attn, 0.0)
        new_slots = jnp.einsum('bjd,bij->bid', v, attn) / \
                    (jnp.sum(attn, axis=-1, keepdims=True) + eps)
    return new_slots


if __name__ == "__main__":
    # x is (b, dim, h, w); meta_embed is (embed_num, dim).
    B, DIM, H, W = 2, 32, 16, 16
    EMBED_NUM, ITERS, ALPHA = 8, 3, 0.1

    key = jax.random.PRNGKey(0)
    k_x, k_me, k_w, k_b = jax.random.split(key, 4)

    x = jax.random.normal(k_x, (B, DIM, H, W), jnp.float32)
    meta_embed = jax.random.normal(k_me, (EMBED_NUM, DIM), jnp.float32)

    # to_q Linear(dim, dim): weight (out, in); pass W^T so y = x @ wq_t + bq.
    W = jax.random.normal(k_w, (DIM, DIM), jnp.float32) / jnp.sqrt(DIM)
    wq_t = W.T
    bq = 0.1 * jax.random.normal(k_b, (DIM,), jnp.float32)

    # BatchNorm affine params at their PyTorch defaults (ones / zeros),
    # track_running_stats=False -> batch statistics are used every call.
    g1 = jnp.ones((DIM,), jnp.float32)
    b1 = jnp.zeros((DIM,), jnp.float32)
    g2 = jnp.ones((EMBED_NUM,), jnp.float32)
    b2 = jnp.zeros((EMBED_NUM,), jnp.float32)

    out = meta_part_forward(x, meta_embed, wq_t, bq, g1, b1, g2, b2,
                            iters=ITERS, alpha=ALPHA)
    out = jax.block_until_ready(out)

    ref = meta_part_reference(x, meta_embed, wq_t, bq, g1, b1, g2, b2,
                              iters=ITERS, alpha=ALPHA)
    np.testing.assert_allclose(np.asarray(out), np.asarray(ref),
                               rtol=1e-4, atol=1e-4)
    assert out.shape == (B, EMBED_NUM, DIM)
    print("KERNEL_OK")
</pallas_src>

<mosaic_0001>
module attributes {stable_mosaic.version = 11 : i64} {
  func.func @_meta_part_kernel(%arg0: memref<2x32x256xf32, #tpu.memory_space<vmem>>, %arg1: memref<8x32xf32, #tpu.memory_space<vmem>>, %arg2: memref<32x32xf32, #tpu.memory_space<vmem>>, %arg3: memref<1x32xf32, #tpu.memory_space<vmem>>, %arg4: memref<1x32xf32, #tpu.memory_space<vmem>>, %arg5: memref<1x32xf32, #tpu.memory_space<vmem>>, %arg6: memref<8x1xf32, #tpu.memory_space<vmem>>, %arg7: memref<8x1xf32, #tpu.memory_space<vmem>>, %arg8: memref<2x8x32xf32, #tpu.memory_space<vmem>>) attributes {dimension_semantics = [], scalar_prefetch = 0 : i64, scratch_operands = 0 : i64, tpu.core_type = #tpu.core_type<tc>} {
    %c0 = arith.constant 0 : index
    %c0_0 = arith.constant 0 : index
    %c0_1 = arith.constant 0 : index
    %0 = vector.load %arg0[%c0, %c0_0, %c0_1] : memref<2x32x256xf32, #tpu.memory_space<vmem>>, vector<1x32x256xf32>
    %1 = vector.shape_cast %0 : vector<1x32x256xf32> to vector<32x256xf32>
    %c1 = arith.constant 1 : index
    %c0_2 = arith.constant 0 : index
    %c0_3 = arith.constant 0 : index
    %2 = vector.load %arg0[%c1, %c0_2, %c0_3] : memref<2x32x256xf32, #tpu.memory_space<vmem>>, vector<1x32x256xf32>
    %3 = vector.shape_cast %2 : vector<1x32x256xf32> to vector<32x256xf32>
    %c0_4 = arith.constant 0 : index
    %c0_5 = arith.constant 0 : index
    %4 = vector.load %arg1[%c0_4, %c0_5] : memref<8x32xf32, #tpu.memory_space<vmem>>, vector<8x32xf32>
    %c0_6 = arith.constant 0 : index
    %c0_7 = arith.constant 0 : index
    %5 = vector.load %arg2[%c0_6, %c0_7] : memref<32x32xf32, #tpu.memory_space<vmem>>, vector<32x32xf32>
    %c0_8 = arith.constant 0 : index
    %c0_9 = arith.constant 0 : index
    %6 = vector.load %arg3[%c0_8, %c0_9] : memref<1x32xf32, #tpu.memory_space<vmem>>, vector<1x32xf32>
    %c0_10 = arith.constant 0 : index
    %c0_11 = arith.constant 0 : index
    %7 = vector.load %arg4[%c0_10, %c0_11] : memref<1x32xf32, #tpu.memory_space<vmem>>, vector<1x32xf32>
    %c0_12 = arith.constant 0 : index
    %c0_13 = arith.constant 0 : index
    %8 = vector.load %arg5[%c0_12, %c0_13] : memref<1x32xf32, #tpu.memory_space<vmem>>, vector<1x32xf32>
    %c0_14 = arith.constant 0 : index
    %c0_15 = arith.constant 0 : index
    %9 = vector.load %arg6[%c0_14, %c0_15] : memref<8x1xf32, #tpu.memory_space<vmem>>, vector<8x1xf32>
    %c0_16 = arith.constant 0 : index
    %c0_17 = arith.constant 0 : index
    %10 = vector.load %arg7[%c0_16, %c0_17] : memref<8x1xf32, #tpu.memory_space<vmem>>, vector<8x1xf32>
    %cst = arith.constant dense<0.000000e+00> : vector<8x32xf32>
    %11 = tpu.matmul %4, %5, %cst {dimension_numbers = #tpu.dot_dimension_numbers<[1], [0], [0], [1], [0, 0, 1, 1], [], []>} : vector<8x32xf32>, vector<32x32xf32>, vector<8x32xf32> -> vector<8x32xf32>
    %12 = vector.broadcast %6 : vector<1x32xf32> to vector<8x32xf32>
    %13 = arith.addf %11, %12 : vector<8x32xf32>
    %cst_18 = arith.constant dense<0.000000e+00> : vector<32xf32>
    %14 = vector.multi_reduction <add>, %13, %cst_18 [0] : vector<8x32xf32> to vector<32xf32>
    %15 = vector.shape_cast %14 : vector<32xf32> to vector<1x32xf32>
    %cst_19 = arith.constant 0.000000e+00 : f32
    %16 = vector.broadcast %cst_19 : f32 to vector<1x32xf32>
    %17 = arith.addf %16, %15 : vector<1x32xf32>
    %cst_20 = arith.constant 1.250000e-01 : f32
    %18 = vector.broadcast %cst_20 : f32 to vector<1x32xf32>
    %19 = arith.mulf %17, %18 : vector<1x32xf32>
    %20 = arith.mulf %13, %13 : vector<8x32xf32>
    %cst_21 = arith.constant dense<0.000000e+00> : vector<32xf32>
    %21 = vector.multi_reduction <add>, %20, %cst_21 [0] : vector<8x32xf32> to vector<32xf32>
    %22 = vector.shape_cast %21 : vector<32xf32> to vector<1x32xf32>
    %cst_22 = arith.constant 0.000000e+00 : f32
    %23 = vector.broadcast %cst_22 : f32 to vector<1x32xf32>
    %24 = arith.addf %23, %22 : vector<1x32xf32>
    %cst_23 = arith.constant 1.250000e-01 : f32
    %25 = vector.broadcast %cst_23 : f32 to vector<1x32xf32>
    %26 = arith.mulf %24, %25 : vector<1x32xf32>
    %27 = arith.mulf %19, %19 : vector<1x32xf32>
    %28 = arith.subf %26, %27 : vector<1x32xf32>
    %cst_24 = arith.constant 9.99999974E-6 : f32
    %29 = vector.broadcast %cst_24 : f32 to vector<1x32xf32>
    %30 = arith.addf %28, %29 : vector<1x32xf32>
    %31 = math.rsqrt %30 : vector<1x32xf32>
    %32 = arith.mulf %31, %7 : vector<1x32xf32>
    %33 = arith.mulf %19, %32 : vector<1x32xf32>
    %34 = arith.subf %8, %33 : vector<1x32xf32>
    %35 = vector.broadcast %32 : vector<1x32xf32> to vector<8x32xf32>
    %36 = arith.mulf %13, %35 : vector<8x32xf32>
    %37 = vector.broadcast %34 : vector<1x32xf32> to vector<8x32xf32>
    %38 = arith.addf %36, %37 : vector<8x32xf32>
    %cst_25 = arith.constant 0.000000e+00 : f32
    %39 = vector.broadcast %cst_25 : f32 to vector<8x32xf32>
    %40 = arith.maximumf %38, %39 : vector<8x32xf32>
    %cst_26 = arith.constant dense<0.000000e+00> : vector<8x256xf32>
    %41 = tpu.matmul %40, %1, %cst_26 {dimension_numbers = #tpu.dot_dimension_numbers<[1], [0], [0], [1], [0, 0, 1, 1], [], []>} : vector<8x32xf32>, vector<32x256xf32>, vector<8x256xf32> -> vector<8x256xf32>
    %cst_27 = arith.constant dense<0.000000e+00> : vector<8x256xf32>
    %42 = tpu.matmul %40, %3, %cst_27 {dimension_numbers = #tpu.dot_dimension_numbers<[1], [0], [0], [1], [0, 0, 1, 1], [], []>} : vector<8x32xf32>, vector<32x256xf32>, vector<8x256xf32> -> vector<8x256xf32>
    %cst_28 = arith.constant dense<0.000000e+00> : vector<8xf32>
    %43 = vector.multi_reduction <add>, %41, %cst_28 [1] : vector<8x256xf32> to vector<8xf32>
    %44 = vector.shape_cast %43 : vector<8xf32> to vector<8x1xf32>
    %cst_29 = arith.constant 0.000000e+00 : f32
    %45 = vector.broadcast %cst_29 : f32 to vector<8x1xf32>
    %46 = arith.addf %45, %44 : vector<8x1xf32>
    %cst_30 = arith.constant dense<0.000000e+00> : vector<8xf32>
    %47 = vector.multi_reduction <add>, %42, %cst_30 [1] : vector<8x256xf32> to vector<8xf32>
    %48 = vector.shape_cast %47 : vector<8xf32> to vector<8x1xf32>
    %49 = arith.addf %46, %48 : vector<8x1xf32>
    %cst_31 = arith.constant 0.001953125 : f32
    %50 = vector.broadcast %cst_31 : f32 to vector<8x1xf32>
    %51 = arith.mulf %49, %50 : vector<8x1xf32>
    %52 = arith.mulf %41, %41 : vector<8x256xf32>
    %cst_32 = arith.constant dense<0.000000e+00> : vector<8xf32>
    %53 = vector.multi_reduction <add>, %52, %cst_32 [1] : vector<8x256xf32> to vector<8xf32>
    %54 = vector.shape_cast %53 : vector<8xf32> to vector<8x1xf32>
    %cst_33 = arith.constant 0.000000e+00 : f32
    %55 = vector.broadcast %cst_33 : f32 to vector<8x1xf32>
    %56 = arith.addf %55, %54 : vector<8x1xf32>
    %57 = arith.mulf %42, %42 : vector<8x256xf32>
    %cst_34 = arith.constant dense<0.000000e+00> : vector<8xf32>
    %58 = vector.multi_reduction <add>, %57, %cst_34 [1] : vector<8x256xf32> to vector<8xf32>
    %59 = vector.shape_cast %58 : vector<8xf32> to vector<8x1xf32>
    %60 = arith.addf %56, %59 : vector<8x1xf32>
    %cst_35 = arith.constant 0.001953125 : f32
    %61 = vector.broadcast %cst_35 : f32 to vector<8x1xf32>
    %62 = arith.mulf %60, %61 : vector<8x1xf32>
    %63 = arith.mulf %51, %51 : vector<8x1xf32>
    %64 = arith.subf %62, %63 : vector<8x1xf32>
    %cst_36 = arith.constant 9.99999974E-6 : f32
    %65 = vector.broadcast %cst_36 : f32 to vector<8x1xf32>
    %66 = arith.addf %64, %65 : vector<8x1xf32>
    %67 = math.rsqrt %66 : vector<8x1xf32>
    %68 = arith.mulf %67, %9 : vector<8x1xf32>
    %69 = arith.mulf %51, %68 : vector<8x1xf32>
    %70 = arith.subf %10, %69 : vector<8x1xf32>
    %71 = vector.broadcast %68 : vector<8x1xf32> to vector<8x256xf32>
    %72 = arith.mulf %41, %71 : vector<8x256xf32>
    %73 = vector.broadcast %70 : vector<8x1xf32> to vector<8x256xf32>
    %74 = arith.addf %72, %73 : vector<8x256xf32>
    %cst_37 = arith.constant 0.000000e+00 : f32
    %75 = vector.broadcast %cst_37 : f32 to vector<8x256xf32>
    %76 = arith.maximumf %74, %75 : vector<8x256xf32>
    %77 = vector.broadcast %68 : vector<8x1xf32> to vector<8x256xf32>
    %78 = arith.mulf %42, %77 : vector<8x256xf32>
    %79 = vector.broadcast %70 : vector<8x1xf32> to vector<8x256xf32>
    %80 = arith.addf %78, %79 : vector<8x256xf32>
    %cst_38 = arith.constant 0.000000e+00 : f32
    %81 = vector.broadcast %cst_38 : f32 to vector<8x256xf32>
    %82 = arith.maximumf %80, %81 : vector<8x256xf32>
    %cst_39 = arith.constant dense<0.000000e+00> : vector<8x32xf32>
    %83 = tpu.matmul %76, %1, %cst_39 {dimension_numbers = #tpu.dot_dimension_numbers<[1], [1], [0], [0], [0, 0, 1, 0], [], []>} : vector<8x256xf32>, vector<32x256xf32>, vector<8x32xf32> -> vector<8x32xf32>
    %cst_40 = arith.constant dense<0.000000e+00> : vector<8xf32>
    %84 = vector.multi_reduction <add>, %76, %cst_40 [1] : vector<8x256xf32> to vector<8xf32>
    %85 = vector.shape_cast %84 : vector<8xf32> to vector<8x1xf32>
    %cst_41 = arith.constant 9.99999996E-13 : f32
    %86 = vector.broadcast %cst_41 : f32 to vector<8x1xf32>
    %87 = arith.addf %85, %86 : vector<8x1xf32>
    %88 = tpu.reciprocal %87 {approx = true} : vector<8x1xf32> -> vector<8x1xf32>
    %89 = arith.mulf %87, %88 : vector<8x1xf32>
    %cst_42 = arith.constant 2.000000e+00 : f32
    %90 = vector.broadcast %cst_42 : f32 to vector<8x1xf32>
    %91 = arith.subf %90, %89 : vector<8x1xf32>
    %92 = arith.mulf %88, %91 : vector<8x1xf32>
    %93 = vector.broadcast %92 : vector<8x1xf32> to vector<8x32xf32>
    %94 = arith.mulf %83, %93 : vector<8x32xf32>
    %cst_43 = arith.constant dense<0.000000e+00> : vector<8x32xf32>
    %95 = tpu.matmul %82, %3, %cst_43 {dimension_numbers = #tpu.dot_dimension_numbers<[1], [1], [0], [0], [0, 0, 1, 0], [], []>} : vector<8x256xf32>, vector<32x256xf32>, vector<8x32xf32> -> vector<8x32xf32>
    %cst_44 = arith.constant dense<0.000000e+00> : vector<8xf32>
    %96 = vector.multi_reduction <add>, %82, %cst_44 [1] : vector<8x256xf32> to vector<8xf32>
    %97 = vector.shape_cast %96 : vector<8xf32> to vector<8x1xf32>
    %cst_45 = arith.constant 9.99999996E-13 : f32
    %98 = vector.broadcast %cst_45 : f32 to vector<8x1xf32>
    %99 = arith.addf %97, %98 : vector<8x1xf32>
    %100 = tpu.reciprocal %99 {approx = true} : vector<8x1xf32> -> vector<8x1xf32>
    %101 = arith.mulf %99, %100 : vector<8x1xf32>
    %cst_46 = arith.constant 2.000000e+00 : f32
    %102 = vector.broadcast %cst_46 : f32 to vector<8x1xf32>
    %103 = arith.subf %102, %101 : vector<8x1xf32>
    %104 = arith.mulf %100, %103 : vector<8x1xf32>
    %105 = vector.broadcast %104 : vector<8x1xf32> to vector<8x32xf32>
    %106 = arith.mulf %95, %105 : vector<8x32xf32>
    %cst_47 = arith.constant 1.000000e-01 : f32
    %107 = vector.broadcast %cst_47 : f32 to vector<8x32xf32>
    %108 = arith.mulf %94, %107 : vector<8x32xf32>
    %cst_48 = arith.constant 0.899999976 : f32
    %109 = vector.broadcast %cst_48 : f32 to vector<8x32xf32>
    %110 = arith.mulf %4, %109 : vector<8x32xf32>
    %111 = arith.addf %108, %110 : vector<8x32xf32>
    %cst_49 = arith.constant 1.000000e-01 : f32
    %112 = vector.broadcast %cst_49 : f32 to vector<8x32xf32>
    %113 = arith.mulf %106, %112 : vector<8x32xf32>
    %cst_50 = arith.constant 0.899999976 : f32
    %114 = vector.broadcast %cst_50 : f32 to vector<8x32xf32>
    %115 = arith.mulf %4, %114 : vector<8x32xf32>
    %116 = arith.addf %113, %115 : vector<8x32xf32>
    %cst_51 = arith.constant dense<0.000000e+00> : vector<8x32xf32>
    %117 = tpu.matmul %111, %5, %cst_51 {dimension_numbers = #tpu.dot_dimension_numbers<[1], [0], [0], [1], [0, 0, 1, 1], [], []>} : vector<8x32xf32>, vector<32x32xf32>, vector<8x32xf32> -> vector<8x32xf32>
    %118 = vector.broadcast %6 : vector<1x32xf32> to vector<8x32xf32>
    %119 = arith.addf %117, %118 : vector<8x32xf32>
    %cst_52 = arith.constant dense<0.000000e+00> : vector<8x32xf32>
    %120 = tpu.matmul %116, %5, %cst_52 {dimension_numbers = #tpu.dot_dimension_numbers<[1], [0], [0], [1], [0, 0, 1, 1], [], []>} : vector<8x32xf32>, vector<32x32xf32>, vector<8x32xf32> -> vector<8x32xf32>
    %121 = vector.broadcast %6 : vector<1x32xf32> to vector<8x32xf32>
    %122 = arith.addf %120, %121 : vector<8x32xf32>
    %cst_53 = arith.constant dense<0.000000e+00> : vector<32xf32>
    %123 = vector.multi_reduction <add>, %119, %cst_53 [0] : vector<8x32xf32> to vector<32xf32>
    %124 = vector.shape_cast %123 : vector<32xf32> to vector<1x32xf32>
    %cst_54 = arith.constant 0.000000e+00 : f32
    %125 = vector.broadcast %cst_54 : f32 to vector<1x32xf32>
    %126 = arith.addf %125, %124 : vector<1x32xf32>
    %cst_55 = arith.constant dense<0.000000e+00> : vector<32xf32>
    %127 = vector.multi_reduction <add>, %122, %cst_55 [0] : vector<8x32xf32> to vector<32xf32>
    %128 = vector.shape_cast %127 : vector<32xf32> to vector<1x32xf32>
    %129 = arith.addf %126, %128 : vector<1x32xf32>
    %cst_56 = arith.constant 6.250000e-02 : f32
    %130 = vector.broadcast %cst_56 : f32 to vector<1x32xf32>
    %131 = arith.mulf %129, %130 : vector<1x32xf32>
    %132 = arith.mulf %119, %119 : vector<8x32xf32>
    %cst_57 = arith.constant dense<0.000000e+00> : vector<32xf32>
    %133 = vector.multi_reduction <add>, %132, %cst_57 [0] : vector<8x32xf32> to vector<32xf32>
    %134 = vector.shape_cast %133 : vector<32xf32> to vector<1x32xf32>
    %cst_58 = arith.constant 0.000000e+00 : f32
    %135 = vector.broadcast %cst_58 : f32 to vector<1x32xf32>
    %136 = arith.addf %135, %134 : vector<1x32xf32>
    %137 = arith.mulf %122, %122 : vector<8x32xf32>
    %cst_59 = arith.constant dense<0.000000e+00> : vector<32xf32>
    %138 = vector.multi_reduction <add>, %137, %cst_59 [0] : vector<8x32xf32> to vector<32xf32>
    %139 = vector.shape_cast %138 : vector<32xf32> to vector<1x32xf32>
    %140 = arith.addf %136, %139 : vector<1x32xf32>
    %cst_60 = arith.constant 6.250000e-02 : f32
    %141 = vector.broadcast %cst_60 : f32 to vector<1x32xf32>
    %142 = arith.mulf %140, %141 : vector<1x32xf32>
    %143 = arith.mulf %131, %131 : vector<1x32xf32>
    %144 = arith.subf %142, %143 : vector<1x32xf32>
    %cst_61 = arith.constant 9.99999974E-6 : f32
    %145 = vector.broadcast %cst_61 : f32 to vector<1x32xf32>
    %146 = arith.addf %144, %145 : vector<1x32xf32>
    %147 = math.rsqrt %146 : vector<1x32xf32>
    %148 = arith.mulf %147, %7 : vector<1x32xf32>
    %149 = arith.mulf %131, %148 : vector<1x32xf32>
    %150 = arith.subf %8, %149 : vector<1x32xf32>
    %151 = vector.broadcast %148 : vector<1x32xf32> to vector<8x32xf32>
    %152 = arith.mulf %119, %151 : vector<8x32xf32>
    %153 = vector.broadcast %150 : vector<1x32xf32> to vector<8x32xf32>
    %154 = arith.addf %152, %153 : vector<8x32xf32>
    %cst_62 = arith.constant 0.000000e+00 : f32
    %155 = vector.broadcast %cst_62 : f32 to vector<8x32xf32>
    %156 = arith.maximumf %154, %155 : vector<8x32xf32>
    %157 = vector.broadcast %148 : vector<1x32xf32> to vector<8x32xf32>
    %158 = arith.mulf %122, %157 : vector<8x32xf32>
    %159 = vector.broadcast %150 : vector<1x32xf32> to vector<8x32xf32>
    %160 = arith.addf %158, %159 : vector<8x32xf32>
    %cst_63 = arith.constant 0.000000e+00 : f32
    %161 = vector.broadcast %cst_63 : f32 to vector<8x32xf32>
    %162 = arith.maximumf %160, %161 : vector<8x32xf32>
    %cst_64 = arith.constant dense<0.000000e+00> : vector<8x256xf32>
    %163 = tpu.matmul %156, %1, %cst_64 {dimension_numbers = #tpu.dot_dimension_numbers<[1], [0], [0], [1], [0, 0, 1, 1], [], []>} : vector<8x32xf32>, vector<32x256xf32>, vector<8x256xf32> -> vector<8x256xf32>
    %cst_65 = arith.constant dense<0.000000e+00> : vector<8x256xf32>
    %164 = tpu.matmul %162, %3, %cst_65 {dimension_numbers = #tpu.dot_dimension_numbers<[1], [0], [0], [1], [0, 0, 1, 1], [], []>} : vector<8x32xf32>, vector<32x256xf32>, vector<8x256xf32> -> vector<8x256xf32>
    %cst_66 = arith.constant dense<0.000000e+00> : vector<8xf32>
    %165 = vector.multi_reduction <add>, %163, %cst_66 [1] : vector<8x256xf32> to vector<8xf32>
    %166 = vector.shape_cast %165 : vector<8xf32> to vector<8x1xf32>
    %cst_67 = arith.constant 0.000000e+00 : f32
    %167 = vector.broadcast %cst_67 : f32 to vector<8x1xf32>
    %168 = arith.addf %167, %166 : vector<8x1xf32>
    %cst_68 = arith.constant dense<0.000000e+00> : vector<8xf32>
    %169 = vector.multi_reduction <add>, %164, %cst_68 [1] : vector<8x256xf32> to vector<8xf32>
    %170 = vector.shape_cast %169 : vector<8xf32> to vector<8x1xf32>
    %171 = arith.addf %168, %170 : vector<8x1xf32>
    %cst_69 = arith.constant 0.001953125 : f32
    %172 = vector.broadcast %cst_69 : f32 to vector<8x1xf32>
    %173 = arith.mulf %171, %172 : vector<8x1xf32>
    %174 = arith.mulf %163, %163 : vector<8x256xf32>
    %cst_70 = arith.constant dense<0.000000e+00> : vector<8xf32>
    %175 = vector.multi_reduction <add>, %174, %cst_70 [1] : vector<8x256xf32> to vector<8xf32>
    %176 = vector.shape_cast %175 : vector<8xf32> to vector<8x1xf32>
    %cst_71 = arith.constant 0.000000e+00 : f32
    %177 = vector.broadcast %cst_71 : f32 to vector<8x1xf32>
    %178 = arith.addf %177, %176 : vector<8x1xf32>
    %179 = arith.mulf %164, %164 : vector<8x256xf32>
    %cst_72 = arith.constant dense<0.000000e+00> : vector<8xf32>
    %180 = vector.multi_reduction <add>, %179, %cst_72 [1] : vector<8x256xf32> to vector<8xf32>
    %181 = vector.shape_cast %180 : vector<8xf32> to vector<8x1xf32>
    %182 = arith.addf %178, %181 : vector<8x1xf32>
    %cst_73 = arith.constant 0.001953125 : f32
    %183 = vector.broadcast %cst_73 : f32 to vector<8x1xf32>
    %184 = arith.mulf %182, %183 : vector<8x1xf32>
    %185 = arith.mulf %173, %173 : vector<8x1xf32>
    %186 = arith.subf %184, %185 : vector<8x1xf32>
    %cst_74 = arith.constant 9.99999974E-6 : f32
    %187 = vector.broadcast %cst_74 : f32 to vector<8x1xf32>
    %188 = arith.addf %186, %187 : vector<8x1xf32>
    %189 = math.rsqrt %188 : vector<8x1xf32>
    %190 = arith.mulf %189, %9 : vector<8x1xf32>
    %191 = arith.mulf %173, %190 : vector<8x1xf32>
    %192 = arith.subf %10, %191 : vector<8x1xf32>
    %193 = vector.broadcast %190 : vector<8x1xf32> to vector<8x256xf32>
    %194 = arith.mulf %163, %193 : vector<8x256xf32>
    %195 = vector.broadcast %192 : vector<8x1xf32> to vector<8x256xf32>
    %196 = arith.addf %194, %195 : vector<8x256xf32>
    %cst_75 = arith.constant 0.000000e+00 : f32
    %197 = vector.broadcast %cst_75 : f32 to vector<8x256xf32>
    %198 = arith.maximumf %196, %197 : vector<8x256xf32>
    %199 = vector.broadcast %190 : vector<8x1xf32> to vector<8x256xf32>
    %200 = arith.mulf %164, %199 : vector<8x256xf32>
    %201 = vector.broadcast %192 : vector<8x1xf32> to vector<8x256xf32>
    %202 = arith.addf %200, %201 : vector<8x256xf32>
    %cst_76 = arith.constant 0.000000e+00 : f32
    %203 = vector.broadcast %cst_76 : f32 to vector<8x256xf32>
    %204 = arith.maximumf %202, %203 : vector<8x256xf32>
    %cst_77 = arith.constant dense<0.000000e+00> : vector<8x32xf32>
    %205 = tpu.matmul %198, %1, %cst_77 {dimension_numbers = #tpu.dot_dimension_numbers<[1], [1], [0], [0], [0, 0, 1, 0], [], []>} : vector<8x256xf32>, vector<32x256xf32>, vector<8x32xf32> -> vector<8x32xf32>
    %cst_78 = arith.constant dense<0.000000e+00> : vector<8xf32>
    %206 = vector.multi_reduction <add>, %198, %cst_78 [1] : vector<8x256xf32> to vector<8xf32>
    %207 = vector.shape_cast %206 : vector<8xf32> to vector<8x1xf32>
    %cst_79 = arith.constant 9.99999996E-13 : f32
    %208 = vector.broadcast %cst_79 : f32 to vector<8x1xf32>
    %209 = arith.addf %207, %208 : vector<8x1xf32>
    %210 = tpu.reciprocal %209 {approx = true} : vector<8x1xf32> -> vector<8x1xf32>
    %211 = arith.mulf %209, %210 : vector<8x1xf32>
    %cst_80 = arith.constant 2.000000e+00 : f32
    %212 = vector.broadcast %cst_80 : f32 to vector<8x1xf32>
    %213 = arith.subf %212, %211 : vector<8x1xf32>
    %214 = arith.mulf %210, %213 : vector<8x1xf32>
    %215 = vector.broadcast %214 : vector<8x1xf32> to vector<8x32xf32>
    %216 = arith.mulf %205, %215 : vector<8x32xf32>
    %cst_81 = arith.constant dense<0.000000e+00> : vector<8x32xf32>
    %217 = tpu.matmul %204, %3, %cst_81 {dimension_numbers = #tpu.dot_dimension_numbers<[1], [1], [0], [0], [0, 0, 1, 0], [], []>} : vector<8x256xf32>, vector<32x256xf32>, vector<8x32xf32> -> vector<8x32xf32>
    %cst_82 = arith.constant dense<0.000000e+00> : vector<8xf32>
    %218 = vector.multi_reduction <add>, %204, %cst_82 [1] : vector<8x256xf32> to vector<8xf32>
    %219 = vector.shape_cast %218 : vector<8xf32> to vector<8x1xf32>
    %cst_83 = arith.constant 9.99999996E-13 : f32
    %220 = vector.broadcast %cst_83 : f32 to vector<8x1xf32>
    %221 = arith.addf %219, %220 : vector<8x1xf32>
    %222 = tpu.reciprocal %221 {approx = true} : vector<8x1xf32> -> vector<8x1xf32>
    %223 = arith.mulf %221, %222 : vector<8x1xf32>
    %cst_84 = arith.constant 2.000000e+00 : f32
    %224 = vector.broadcast %cst_84 : f32 to vector<8x1xf32>
    %225 = arith.subf %224, %223 : vector<8x1xf32>
    %226 = arith.mulf %222, %225 : vector<8x1xf32>
    %227 = vector.broadcast %226 : vector<8x1xf32> to vector<8x32xf32>
    %228 = arith.mulf %217, %227 : vector<8x32xf32>
    %cst_85 = arith.constant 1.000000e-01 : f32
    %229 = vector.broadcast %cst_85 : f32 to vector<8x32xf32>
    %230 = arith.mulf %216, %229 : vector<8x32xf32>
    %cst_86 = arith.constant 0.899999976 : f32
    %231 = vector.broadcast %cst_86 : f32 to vector<8x32xf32>
    %232 = arith.mulf %111, %231 : vector<8x32xf32>
    %233 = arith.addf %230, %232 : vector<8x32xf32>
    %cst_87 = arith.constant 1.000000e-01 : f32
    %234 = vector.broadcast %cst_87 : f32 to vector<8x32xf32>
    %235 = arith.mulf %228, %234 : vector<8x32xf32>
    %cst_88 = arith.constant 0.899999976 : f32
    %236 = vector.broadcast %cst_88 : f32 to vector<8x32xf32>
    %237 = arith.mulf %116, %236 : vector<8x32xf32>
    %238 = arith.addf %235, %237 : vector<8x32xf32>
    %cst_89 = arith.constant dense<0.000000e+00> : vector<8x32xf32>
    %239 = tpu.matmul %233, %5, %cst_89 {dimension_numbers = #tpu.dot_dimension_numbers<[1], [0], [0], [1], [0, 0, 1, 1], [], []>} : vector<8x32xf32>, vector<32x32xf32>, vector<8x32xf32> -> vector<8x32xf32>
    %240 = vector.broadcast %6 : vector<1x32xf32> to vector<8x32xf32>
    %241 = arith.addf %239, %240 : vector<8x32xf32>
    %cst_90 = arith.constant dense<0.000000e+00> : vector<8x32xf32>
    %242 = tpu.matmul %238, %5, %cst_90 {dimension_numbers = #tpu.dot_dimension_numbers<[1], [0], [0], [1], [0, 0, 1, 1], [], []>} : vector<8x32xf32>, vector<32x32xf32>, vector<8x32xf32> -> vector<8x32xf32>
    %243 = vector.broadcast %6 : vector<1x32xf32> to vector<8x32xf32>
    %244 = arith.addf %242, %243 : vector<8x32xf32>
    %cst_91 = arith.constant dense<0.000000e+00> : vector<32xf32>
    %245 = vector.multi_reduction <add>, %241, %cst_91 [0] : vector<8x32xf32> to vector<32xf32>
    %246 = vector.shape_cast %245 : vector<32xf32> to vector<1x32xf32>
    %cst_92 = arith.constant 0.000000e+00 : f32
    %247 = vector.broadcast %cst_92 : f32 to vector<1x32xf32>
    %248 = arith.addf %247, %246 : vector<1x32xf32>
    %cst_93 = arith.constant dense<0.000000e+00> : vector<32xf32>
    %249 = vector.multi_reduction <add>, %244, %cst_93 [0] : vector<8x32xf32> to vector<32xf32>
    %250 = vector.shape_cast %249 : vector<32xf32> to vector<1x32xf32>
    %251 = arith.addf %248, %250 : vector<1x32xf32>
    %cst_94 = arith.constant 6.250000e-02 : f32
    %252 = vector.broadcast %cst_94 : f32 to vector<1x32xf32>
    %253 = arith.mulf %251, %252 : vector<1x32xf32>
    %254 = arith.mulf %241, %241 : vector<8x32xf32>
    %cst_95 = arith.constant dense<0.000000e+00> : vector<32xf32>
    %255 = vector.multi_reduction <add>, %254, %cst_95 [0] : vector<8x32xf32> to vector<32xf32>
    %256 = vector.shape_cast %255 : vector<32xf32> to vector<1x32xf32>
    %cst_96 = arith.constant 0.000000e+00 : f32
    %257 = vector.broadcast %cst_96 : f32 to vector<1x32xf32>
    %258 = arith.addf %257, %256 : vector<1x32xf32>
    %259 = arith.mulf %244, %244 : vector<8x32xf32>
    %cst_97 = arith.constant dense<0.000000e+00> : vector<32xf32>
    %260 = vector.multi_reduction <add>, %259, %cst_97 [0] : vector<8x32xf32> to vector<32xf32>
    %261 = vector.shape_cast %260 : vector<32xf32> to vector<1x32xf32>
    %262 = arith.addf %258, %261 : vector<1x32xf32>
    %cst_98 = arith.constant 6.250000e-02 : f32
    %263 = vector.broadcast %cst_98 : f32 to vector<1x32xf32>
    %264 = arith.mulf %262, %263 : vector<1x32xf32>
    %265 = arith.mulf %253, %253 : vector<1x32xf32>
    %266 = arith.subf %264, %265 : vector<1x32xf32>
    %cst_99 = arith.constant 9.99999974E-6 : f32
    %267 = vector.broadcast %cst_99 : f32 to vector<1x32xf32>
    %268 = arith.addf %266, %267 : vector<1x32xf32>
    %269 = math.rsqrt %268 : vector<1x32xf32>
    %270 = arith.mulf %269, %7 : vector<1x32xf32>
    %271 = arith.mulf %253, %270 : vector<1x32xf32>
    %272 = arith.subf %8, %271 : vector<1x32xf32>
    %273 = vector.broadcast %270 : vector<1x32xf32> to vector<8x32xf32>
    %274 = arith.mulf %241, %273 : vector<8x32xf32>
    %275 = vector.broadcast %272 : vector<1x32xf32> to vector<8x32xf32>
    %276 = arith.addf %274, %275 : vector<8x32xf32>
    %cst_100 = arith.constant 0.000000e+00 : f32
    %277 = vector.broadcast %cst_100 : f32 to vector<8x32xf32>
    %278 = arith.maximumf %276, %277 : vector<8x32xf32>
    %279 = vector.broadcast %270 : vector<1x32xf32> to vector<8x32xf32>
    %280 = arith.mulf %244, %279 : vector<8x32xf32>
    %281 = vector.broadcast %272 : vector<1x32xf32> to vector<8x32xf32>
    %282 = arith.addf %280, %281 : vector<8x32xf32>
    %cst_101 = arith.constant 0.000000e+00 : f32
    %283 = vector.broadcast %cst_101 : f32 to vector<8x32xf32>
    %284 = arith.maximumf %282, %283 : vector<8x32xf32>
    %cst_102 = arith.constant dense<0.000000e+00> : vector<8x256xf32>
    %285 = tpu.matmul %278, %1, %cst_102 {dimension_numbers = #tpu.dot_dimension_numbers<[1], [0], [0], [1], [0, 0, 1, 1], [], []>} : vector<8x32xf32>, vector<32x256xf32>, vector<8x256xf32> -> vector<8x256xf32>
    %cst_103 = arith.constant dense<0.000000e+00> : vector<8x256xf32>
    %286 = tpu.matmul %284, %3, %cst_103 {dimension_numbers = #tpu.dot_dimension_numbers<[1], [0], [0], [1], [0, 0, 1, 1], [], []>} : vector<8x32xf32>, vector<32x256xf32>, vector<8x256xf32> -> vector<8x256xf32>
    %cst_104 = arith.constant dense<0.000000e+00> : vector<8xf32>
    %287 = vector.multi_reduction <add>, %285, %cst_104 [1] : vector<8x256xf32> to vector<8xf32>
    %288 = vector.shape_cast %287 : vector<8xf32> to vector<8x1xf32>
    %cst_105 = arith.constant 0.000000e+00 : f32
    %289 = vector.broadcast %cst_105 : f32 to vector<8x1xf32>
    %290 = arith.addf %289, %288 : vector<8x1xf32>
    %cst_106 = arith.constant dense<0.000000e+00> : vector<8xf32>
    %291 = vector.multi_reduction <add>, %286, %cst_106 [1] : vector<8x256xf32> to vector<8xf32>
    %292 = vector.shape_cast %291 : vector<8xf32> to vector<8x1xf32>
    %293 = arith.addf %290, %292 : vector<8x1xf32>
    %cst_107 = arith.constant 0.001953125 : f32
    %294 = vector.broadcast %cst_107 : f32 to vector<8x1xf32>
    %295 = arith.mulf %293, %294 : vector<8x1xf32>
    %296 = arith.mulf %285, %285 : vector<8x256xf32>
    %cst_108 = arith.constant dense<0.000000e+00> : vector<8xf32>
    %297 = vector.multi_reduction <add>, %296, %cst_108 [1] : vector<8x256xf32> to vector<8xf32>
    %298 = vector.shape_cast %297 : vector<8xf32> to vector<8x1xf32>
    %cst_109 = arith.constant 0.000000e+00 : f32
    %299 = vector.broadcast %cst_109 : f32 to vector<8x1xf32>
    %300 = arith.addf %299, %298 : vector<8x1xf32>
    %301 = arith.mulf %286, %286 : vector<8x256xf32>
    %cst_110 = arith.constant dense<0.000000e+00> : vector<8xf32>
    %302 = vector.multi_reduction <add>, %301, %cst_110 [1] : vector<8x256xf32> to vector<8xf32>
    %303 = vector.shape_cast %302 : vector<8xf32> to vector<8x1xf32>
    %304 = arith.addf %300, %303 : vector<8x1xf32>
    %cst_111 = arith.constant 0.001953125 : f32
    %305 = vector.broadcast %cst_111 : f32 to vector<8x1xf32>
    %306 = arith.mulf %304, %305 : vector<8x1xf32>
    %307 = arith.mulf %295, %295 : vector<8x1xf32>
    %308 = arith.subf %306, %307 : vector<8x1xf32>
    %cst_112 = arith.constant 9.99999974E-6 : f32
    %309 = vector.broadcast %cst_112 : f32 to vector<8x1xf32>
    %310 = arith.addf %308, %309 : vector<8x1xf32>
    %311 = math.rsqrt %310 : vector<8x1xf32>
    %312 = arith.mulf %311, %9 : vector<8x1xf32>
    %313 = arith.mulf %295, %312 : vector<8x1xf32>
    %314 = arith.subf %10, %313 : vector<8x1xf32>
    %315 = vector.broadcast %312 : vector<8x1xf32> to vector<8x256xf32>
    %316 = arith.mulf %285, %315 : vector<8x256xf32>
    %317 = vector.broadcast %314 : vector<8x1xf32> to vector<8x256xf32>
    %318 = arith.addf %316, %317 : vector<8x256xf32>
    %cst_113 = arith.constant 0.000000e+00 : f32
    %319 = vector.broadcast %cst_113 : f32 to vector<8x256xf32>
    %320 = arith.maximumf %318, %319 : vector<8x256xf32>
    %321 = vector.broadcast %312 : vector<8x1xf32> to vector<8x256xf32>
    %322 = arith.mulf %286, %321 : vector<8x256xf32>
    %323 = vector.broadcast %314 : vector<8x1xf32> to vector<8x256xf32>
    %324 = arith.addf %322, %323 : vector<8x256xf32>
    %cst_114 = arith.constant 0.000000e+00 : f32
    %325 = vector.broadcast %cst_114 : f32 to vector<8x256xf32>
    %326 = arith.maximumf %324, %325 : vector<8x256xf32>
    %cst_115 = arith.constant dense<0.000000e+00> : vector<8x32xf32>
    %327 = tpu.matmul %320, %1, %cst_115 {dimension_numbers = #tpu.dot_dimension_numbers<[1], [1], [0], [0], [0, 0, 1, 0], [], []>} : vector<8x256xf32>, vector<32x256xf32>, vector<8x32xf32> -> vector<8x32xf32>
    %cst_116 = arith.constant dense<0.000000e+00> : vector<8xf32>
    %328 = vector.multi_reduction <add>, %320, %cst_116 [1] : vector<8x256xf32> to vector<8xf32>
    %329 = vector.shape_cast %328 : vector<8xf32> to vector<8x1xf32>
    %cst_117 = arith.constant 9.99999996E-13 : f32
    %330 = vector.broadcast %cst_117 : f32 to vector<8x1xf32>
    %331 = arith.addf %329, %330 : vector<8x1xf32>
    %332 = tpu.reciprocal %331 {approx = true} : vector<8x1xf32> -> vector<8x1xf32>
    %333 = arith.mulf %331, %332 : vector<8x1xf32>
    %cst_118 = arith.constant 2.000000e+00 : f32
    %334 = vector.broadcast %cst_118 : f32 to vector<8x1xf32>
    %335 = arith.subf %334, %333 : vector<8x1xf32>
    %336 = arith.mulf %332, %335 : vector<8x1xf32>
    %337 = vector.broadcast %336 : vector<8x1xf32> to vector<8x32xf32>
    %338 = arith.mulf %327, %337 : vector<8x32xf32>
    %cst_119 = arith.constant dense<0.000000e+00> : vector<8x32xf32>
    %339 = tpu.matmul %326, %3, %cst_119 {dimension_numbers = #tpu.dot_dimension_numbers<[1], [1], [0], [0], [0, 0, 1, 0], [], []>} : vector<8x256xf32>, vector<32x256xf32>, vector<8x32xf32> -> vector<8x32xf32>
    %cst_120 = arith.constant dense<0.000000e+00> : vector<8xf32>
    %340 = vector.multi_reduction <add>, %326, %cst_120 [1] : vector<8x256xf32> to vector<8xf32>
    %341 = vector.shape_cast %340 : vector<8xf32> to vector<8x1xf32>
    %cst_121 = arith.constant 9.99999996E-13 : f32
    %342 = vector.broadcast %cst_121 : f32 to vector<8x1xf32>
    %343 = arith.addf %341, %342 : vector<8x1xf32>
    %344 = tpu.reciprocal %343 {approx = true} : vector<8x1xf32> -> vector<8x1xf32>
    %345 = arith.mulf %343, %344 : vector<8x1xf32>
    %cst_122 = arith.constant 2.000000e+00 : f32
    %346 = vector.broadcast %cst_122 : f32 to vector<8x1xf32>
    %347 = arith.subf %346, %345 : vector<8x1xf32>
    %348 = arith.mulf %344, %347 : vector<8x1xf32>
    %349 = vector.broadcast %348 : vector<8x1xf32> to vector<8x32xf32>
    %350 = arith.mulf %339, %349 : vector<8x32xf32>
    %c0_123 = arith.constant 0 : index
    %c0_124 = arith.constant 0 : index
    %c0_125 = arith.constant 0 : index
    %351 = vector.load %arg8[%c0_123, %c0_124, %c0_125] : memref<2x8x32xf32, #tpu.memory_space<vmem>>, vector<1x8x32xf32>
    %352 = vector.shape_cast %351 : vector<1x8x32xf32> to vector<8x32xf32>
    %353 = vector.shape_cast %338 : vector<8x32xf32> to vector<1x8x32xf32>
    tpu.vector_store %arg8[%c0_123, %c0_124, %c0_125], %353 {strides = array<i32>} : memref<2x8x32xf32, #tpu.memory_space<vmem>>, vector<1x8x32xf32>,
    %c1_126 = arith.constant 1 : index
    %c0_127 = arith.constant 0 : index
    %c0_128 = arith.constant 0 : index
    %354 = vector.load %arg8[%c1_126, %c0_127, %c0_128] : memref<2x8x32xf32, #tpu.memory_space<vmem>>, vector<1x8x32xf32>
    %355 = vector.shape_cast %354 : vector<1x8x32xf32> to vector<8x32xf32>
    %356 = vector.shape_cast %350 : vector<8x32xf32> to vector<1x8x32xf32>
    tpu.vector_store %arg8[%c1_126, %c0_127, %c0_128], %356 {strides = array<i32>} : memref<2x8x32xf32, #tpu.memory_space<vmem>>, vector<1x8x32xf32>,
    return
  }
}

</mosaic_0001>

<bundles_post_ra>
// kernel: tpu_custom_call.1
= control target key start
LH: loop header
LB: loop body
LE: loop exit
PB: predicated region body
PF: predicated region fallthrough
CT: control target
= control target key end

     0   :  { %13 = vsyncpa [#allocation3], 0  ;;  %s2331_s0 = inlined_call_operand.hbm [shape: f32[2,32,256], index: 0, kind: input, shape index: {}]   ;;  %s2332_s1 = inlined_call_operand.vmem [shape: f32[8,32], index: 1, kind: input, shape index: {}]   ;;  %s2333_s2 = inlined_call_operand.hbm [shape: f32[32,32], index: 2, kind: input, shape index: {}]   ;;  %s2334_s3 = inlined_call_operand.vmem [shape: f32[1,32], index: 3, kind: input, shape index: {}]   ;;  %s2335_s4 = inlined_call_operand.vmem [shape: f32[1,32], index: 4, kind: input, shape index: {}]   ;;  %s2336_s5 = inlined_call_operand.vmem [shape: f32[1,32], index: 5, kind: input, shape index: {}]   ;;  %s2337_s6 = inlined_call_operand.vmem [shape: f32[8,1], index: 6, kind: input, shape index: {}]   ;;  %s2338_s7 = inlined_call_operand.vmem [shape: f32[8,1], index: 7, kind: input, shape index: {}]   ;;  %s2339_s8 = inlined_call_operand.hbm [shape: f32[2,8,32], index: 8, kind: output, shape index: {}]  }
   0x1   :  { %14 = vsyncpa [#allocation6], 0 }
   0x2   :  { %15 = vsyncpa [#allocation4], 0  ;;  %s2041_s27 = smov [#allocation2]   ;;  %s1969_s9 = scalar_lea.hbm %s2331_s0, 2048 }
   0x3   :  { %s21_s28 = sshll.u32 %s2041_s27, 4  ;;  %p1970_p0 = scmp.ne.s32.totalorder %s2331_s0, %s1969_s9  ;;  %s22_s28 = int_to_ptr.vmem [resolvable:$true] %s21_s28 }
   0x4   :  { %p1973_p1 = scmp.lt.u32.totalorder %s1969_s9, %s2331_s0 }
   0x6   :  { %p1975_p2 = pnand %p1973_p1, %p1970_p0 }
   0x8   :  { %1978 = shalt.err (!%p1975_p2)
}
   0x9   :  { %s1979_s14 = scalar_lea.vmem %s22_s28, 2048  ;;  %p1984_p4 = scmp.lt.s32.totalorder %s22_s28, %s22_s28 }
   0xa   :  { %p1980_p3 = scmp.ne.s32.totalorder %s22_s28, %s1979_s14  ;;  %p1985_p5 = scmp.lt.s32.totalorder %s1979_s14, %s1979_s14 }
   0xc   :  { %p1986_p6 = por %p1985_p5, %p1984_p4 }
   0xe   :  { %p1987_p7 = pnand %p1986_p6, %p1980_p3 }
  0x10   :  { %1990 = shalt.err (!%p1987_p7)
}
  0x11   :  { %s2042_s15 = smov 256   ;;  %s2043_s16 = smov 16  }
  0x12   :  { %27 = dma.hbm_to_vmem [thread:$0]  %s2331_s0, 2048, %s22_s28, [#allocation3], %s2042_s15, %s2042_s15, %s2043_s16  }
  0x13   :  { %s2044_s19 = smov [#allocation5]   ;;  %s1991_s23 = scalar_lea.hbm %s2333_s2, 512 }
  0x14   :  { %s35_s20 = sshll.u32 %s2044_s19, 4  ;;  %p1992_p8 = scmp.ne.s32.totalorder %s2333_s2, %s1991_s23  ;;  %s36_s20 = int_to_ptr.vmem [resolvable:$true] %s35_s20 }
  0x15   :  { %p1995_p9 = scmp.lt.u32.totalorder %s1991_s23, %s2333_s2 }
  0x17   :  { %p1997_p10 = pnand %p1995_p9, %p1992_p8 }
  0x19   :  { %2000 = shalt.err (!%p1997_p10)
}
  0x1a   :  { %s2001_s29 = scalar_lea.vmem %s36_s20, 512  ;;  %p2006_p12 = scmp.lt.s32.totalorder %s36_s20, %s36_s20 }
  0x1b   :  { %p2002_p11 = scmp.ne.s32.totalorder %s36_s20, %s2001_s29  ;;  %p2007_p13 = scmp.lt.s32.totalorder %s2001_s29, %s2001_s29 }
  0x1d   :  { %p2008_p0 = por %p2007_p13, %p2006_p12 }
  0x1f   :  { %p2009_p1 = pnand %p2008_p0, %p2002_p11 }
  0x21   :  { %2012 = shalt.err (!%p2009_p1)
}
  0x22   :  { %s2045_s0 = smov 128   ;;  %s2046_s28 = smov 8  }
  0x23   :  { %41 = dma.hbm_to_vmem [thread:$0]  %s2333_s2, 512, %s36_s20, [#allocation6], %s2045_s0, %s2045_s0, %s2046_s28  }
  0x24   :  { %2035 = dma.done.wait [#allocation3], 2048  }
  0x25   :  { %2036 = vsyncadd [#allocation3], 4294965248 }
  0x26   :  { %2037 = dma.done.wait [#allocation6], 512  }
  0x27   :  { %2038 = vsyncadd [#allocation6], 4294966784  ;;  %v2047_v0 = vmov 0.0|0.0   ;;  %vm2048_vm0 = vmmov 0   ;;  %v2049_v1 = vmov 0.0   ;;  %v76_v2 = vld [vmem:[#allocation5] sm:$0xff]  ;;  %v191_v57 = vlaneseq }
  0x28   :  { %1806 = vmatprep.subr.bf16.mxu0 %v2047_v0  ;;  %1759 = vmatprep.mubr.msk.f32.mxu0 %vm2048_vm0, %v2049_v1  ;;  %v77_v3 = vld [vmem:[#allocation5 + $0x8] sm:$0xff]  ;;  %v78_v4 = vld [vmem:[#allocation5 + $0x10] sm:$0xff]  ;;  %v79_v6 = vld [vmem:[#allocation5 + $0x18] sm:$0xff]  ;;  %vm91_vm1 = vcmask 261120  }
  0x29   :  { %271 = vmatprep.mubr.f32.mxu1 %v2049_v1  ;;  %v2128_v5 = vpack.c.bf16 %v77_v3, %v76_v2  ;;  %v2131_v7 = vpack.c.bf16 %v79_v6, %v78_v4  ;;  %v2138_v8 = vld [vmem:[%s2332_s1] sm:$0xff]  ;;  %v59_v9 = vld [vmem:[#allocation2 + $0x8] sm:$0xff]  ;;  %v61_v10 = vld [vmem:[#allocation2 + $0x18] sm:$0xff]  ;;  %v192_v58 = vshrl.u32 %v191_v57, 7 }
  0x2a   :  { %v68_v11 = vld [vmem:[#allocation2 + $0x48] sm:$0xff]  ;;  %v2143_v12 = vpack.c.bf16 %v61_v10, %v59_v9  ;;  %v70_v13 = vld [vmem:[#allocation2 + $0x58] sm:$0xff]  ;;  %v58_v14 = vld [vmem:[#allocation2] sm:$0xff] }
  0x2b   :  { %1808 = vmatpush3.bf16.msra.mxu0 %v2128_v5  ;;  %v60_v15 = vld [vmem:[#allocation2 + $0x10] sm:$0xff]  ;;  %v2145_v16 = vpack.c.bf16 %v70_v13, %v68_v11  ;;  %v67_v18 = vld [vmem:[#allocation2 + $0x40] sm:$0xff]  ;;  %v63_v21 = vld [vmem:[#allocation2 + $0x28] sm:$0xff]  ;;  %v2182_v60 = vsub.s32 0, %v192_v58 }
  0x2c   :  { %1809 = vmatprep.subr.bf16.mxu0 %v2047_v0  ;;  %v2147_v17 = vpack.c.bf16 %v60_v15, %v58_v14  ;;  %v69_v19 = vld [vmem:[#allocation2 + $0x50] sm:$0xff]  ;;  %1813 = vmatprep.subr.bf16.mxu1 %v2143_v12  ;;  %v65_v22 = vld [vmem:[#allocation2 + $0x38] sm:$0xff]  ;;  %v72_v23 = vld [vmem:[#allocation2 + $0x68] sm:$0xff] }
  0x2d   :  { %v2150_v20 = vpack.c.bf16 %v69_v19, %v67_v18  ;;  %v2155_v24 = vpack.c.bf16 %v65_v22, %v63_v21  ;;  %v74_v25 = vld [vmem:[#allocation2 + $0x78] sm:$0xff]  ;;  %v62_v26 = vld [vmem:[#allocation2 + $0x20] sm:$0xff]  ;;  %v64_v27 = vld [vmem:[#allocation2 + $0x30] sm:$0xff] }
  0x2e   :  { %1815 = vmatpush1.bf16.msra.mxu1 %v2147_v17  ;;  %v2157_v28 = vpack.c.bf16 %v74_v25, %v72_v23  ;;  %v2159_v29 = vpack.c.bf16 %v64_v27, %v62_v26  ;;  %v71_v30 = vld [vmem:[#allocation2 + $0x60] sm:$0xff]  ;;  %v73_v31 = vld [vmem:[#allocation2 + $0x70] sm:$0xff] }
  0x2f   :  { %1811 = vmatpush3.bf16.msra.mxu0 %v2131_v7  ;;  %1817 = vmatprep.subr.bf16.mxu1 %v2155_v24  ;;  %v2162_v32 = vpack.c.bf16 %v73_v31, %v71_v30  ;;  %v2172_v33 = vld [vmem:[%s2334_s3] ss:$0 sm:$0xff]  ;;  %v2050_v31 = vmov 0  }
  0x30   :  { %1821 = vmatprep.subr.bf16.mxu0 %v2145_v16  ;;  %v2180_v59 = vld [vmem:[%s2335_s4] sm:$0x1]  ;;  %1943 = vset.pattern.permute.xlu0 %v2050_v31 }
  0x31   :  { %v2188_v63 = vld [vmem:[%s2336_s5] sm:$0x1]  ;;  %1944 = vset.pattern.permute.xlu1 %v2050_v31 }
  0x32   :  { %1760 = vmatmul.mubr.msk.f32.vlgmr.msra.gmra.mrb[0].mxu0 %vm91_vm1, %v2138_v8  ;;  %1819 = vmatpush1.bf16.msra.mxu1 %v2159_v29 }
  0x33   :  { %342 = vmatprep.mubr.f32.mxu0 %v2049_v1  ;;  %1823 = vmatpush1.bf16.msra.mxu0 %v2150_v20 }
  0x34   :  { %1825 = vmatprep.subr.bf16.mxu0 %v2157_v28  ;;  %1829 = vmatprep.subr.bf16.mxu1 %v2143_v12 }
  0x37   :  { %1827 = vmatpush1.bf16.msra.mxu0 %v2162_v32 }
  0x38   :  { %1837 = vmatprep.subr.bf16.mxu0 %v2145_v16 }
 0x105   :  { %v161_v34 = vpop.f32.mrb[0].mxu0 }
 0x106   :  { %v162_v35 = vadd.f32 %v2172_v33, %v161_v34  ;;  %v1761_v36 = vpop.f32.mrb[1].mxu0 }
 0x108   :  { %v165_v37 = vsel %vm91_vm1, %v162_v35, 0.0  ;;  %v174_v38 = vmul.f32 %v162_v35, %v162_v35 }
 0x109   :  { %v166_v39 = vrot.slane %v165_v37, 4 }
 0x10a   :  { %v175_v40 = vsel %vm91_vm1, %v174_v38, 0.0 }
 0x10b   :  { %v167_v41 = vadd.f32 %v166_v39, %v165_v37  ;;  %v176_v42 = vrot.slane %v175_v40, 4 }
 0x10d   :  { %v168_v43 = vrot.slane %v167_v41, 2  ;;  %v177_v44 = vadd.f32 %v176_v42, %v175_v40 }
 0x10f   :  { %v169_v45 = vadd.f32 %v168_v43, %v167_v41  ;;  %v178_v46 = vrot.slane %v177_v44, 2 }
 0x111   :  { %v170_v47 = vrot.slane %v169_v45, 1  ;;  %v179_v48 = vadd.f32 %v178_v46, %v177_v44 }
 0x113   :  { %v171_v49 = vadd.f32 %v170_v47, %v169_v45  ;;  %v180_v50 = vrot.slane %v179_v48, 1  ;;  %v2206_v45 = vld [vmem:[%s2337_s6] sm:$0xff]  ;;  %s2051_s6 = smov [#allocation7]  }
 0x115   :  { %v173_v51 = vmul.f32 0.125, %v171_v49  ;;  %v181_v52 = vadd.f32 %v180_v50, %v179_v48  ;;  %v2212_v48 = vld [vmem:[%s2338_s7] sm:$0xff]  ;;  %s1701_s7 = sshll.u32 %s2051_s6, 4  ;;  %s1702_s7 = int_to_ptr.vmem [resolvable:$true] %s1701_s7 }
 0x116   :  { %s2013_s17 = scalar_lea.vmem %s1702_s7, 256  ;;  %p2018_p3 = scmp.lt.s32.totalorder %s1702_s7, %s1702_s7 }
 0x117   :  { %v183_v53 = vmul.f32 0.125, %v181_v52  ;;  %v184_v54 = vmul.f32 %v173_v51, %v173_v51  ;;  %p2014_p2 = scmp.ne.s32.totalorder %s1702_s7, %s2013_s17  ;;  %p2019_p4 = scmp.lt.s32.totalorder %s2013_s17, %s2013_s17 }
 0x119   :  { %v185_v55 = vsub.f32 %v183_v53, %v184_v54  ;;  %p2020_p5 = por %p2019_p4, %p2018_p3 }
 0x11b   :  { %v186_v56 = vadd.f32 1e-05, %v185_v55  ;;  %p2021_p6 = pnand %p2020_p5, %p2014_p2 }
 0x11d   :  { %1945 = vrsqrt.f32 %v186_v56 }
 0x127   :  { %v1946_v61 = vpop.eup %1945 }
 0x128   :  { %v188_v62 = vmul.f32 %v1946_v61, %v2180_v59 }
 0x12a   :  { %v189_v2 = vmul.f32 %v188_v62, %v173_v51  ;;  %v194_v3 = vrot.slane %v188_v62, %v2182_v60 }
 0x12c   :  { %v190_v4 = vsub.f32 %v2188_v63, %v189_v2  ;;  %v195_v6 = vmul.f32 %v194_v3, %v162_v35 }
 0x12e   :  { %v200_v9 = vrot.slane %v190_v4, %v2182_v60 }
 0x130   :  { %v202_v10 = vadd.f32 %v200_v9, %v195_v6 }
 0x132   :  { %v203_v11 = vmax.f32 %v202_v10, 0.0 }
 0x134   :  { %1716 = vmatmul.mubr.msk.f32.vlgmr.msra.gmra.mrb[0].mxu1 %vm91_vm1, %v203_v11  ;;  %1717 = vmatmul.mubr.msk.f32.vlgmr.msra.gmra.mrb[2].mxu0 %vm91_vm1, %v203_v11 }
 0x135   :  { %1831 = vmatpush1.bf16.xpose.msra.mxu1 %v2147_v17  ;;  %1839 = vmatpush1.bf16.xpose.msra.mxu0 %v2150_v20 }
 0x136   :  { %1833 = vmatprep.subr.bf16.mxu1 %v2155_v24  ;;  %1841 = vmatprep.subr.bf16.mxu0 %v2157_v28 }
 0x13d   :  { %1835 = vmatpush1.bf16.xpose.msra.mxu1 %v2159_v29  ;;  %1843 = vmatpush1.bf16.xpose.msra.mxu0 %v2162_v32 }
 0x13e   :  { %1844 = vmatprep.subr.bf16.mxu1 %v2047_v0  ;;  %1850 = vmatprep.subr.bf16.mxu0 %v2047_v0 }
 0x207   :  { %v273_v13 = vpop.f32.mrb[0].mxu1  ;;  %v344_v14 = vpop.f32.mrb[2].mxu0 }
 0x208   :  { %v275_v15 = vpop.f32.mrb[1].mxu1  ;;  %v346_v18 = vpop.f32.mrb[3].mxu0  ;;  %v358_v19 = vmul.f32 %v273_v13, %v273_v13  ;;  %v364_v21 = vmul.f32 %v344_v14, %v344_v14 }
 0x209   :  { %v349_v22 = vadd.f32 %v275_v15, %v273_v13  ;;  %v359_v23 = vmul.f32 %v275_v15, %v275_v15  ;;  %v353_v25 = vadd.f32 %v346_v18, %v344_v14  ;;  %v365_v26 = vmul.f32 %v346_v18, %v346_v18 }
 0x20b   :  { %350 = vadd.xlane.f32.xlu0 %v349_v22  ;;  %v360_v27 = vadd.f32 %v359_v23, %v358_v19  ;;  %v366_v30 = vadd.f32 %v365_v26, %v364_v21 }
 0x20d   :  { %361 = vadd.xlane.f32.xlu1 %v360_v27 }
 0x20f   :  { %354 = vadd.xlane.f32.xlu0 %v353_v25 }
 0x211   :  { %367 = vadd.xlane.f32.xlu1 %v366_v30 }
 0x298   :  { %v351_v34 = vpop.xlane.xlu0 %350 }
 0x29a   :  { %v362_v35 = vpop.xlane.xlu1 %361 }
 0x29c   :  { %v355_v36 = vpop.xlane.xlu0 %354 }
 0x29d   :  { %v356_v37 = vadd.f32 %v355_v36, %v351_v34  ;;  %v559_v34 = vmul.f32 0.9, %v2138_v8 }
 0x29e   :  { %v368_v38 = vpop.xlane.xlu1 %367 }
 0x29f   :  { %v357_v39 = vmul.f32 0.001953125, %v356_v37  ;;  %v369_v40 = vadd.f32 %v368_v38, %v362_v35 }
 0x2a1   :  { %v371_v41 = vmul.f32 %v357_v39, %v357_v39  ;;  %v370_v42 = vmul.f32 0.001953125, %v369_v40 }
 0x2a3   :  { %v372_v43 = vsub.f32 %v370_v42, %v371_v41 }
 0x2a5   :  { %v373_v44 = vadd.f32 1e-05, %v372_v43 }
 0x2a7   :  { %1947 = vrsqrt.f32 %v373_v44 }
 0x2b1   :  { %v1948_v46 = vpop.eup %1947 }
 0x2b2   :  { %v375_v47 = vmul.f32 %v1948_v46, %v2206_v45 }
 0x2b4   :  { %380 = vperm.xlu0 %1943, %v375_v47   ;;  %v376_v49 = vmul.f32 %v375_v47, %v357_v39 }
 0x2b6   :  { %v377_v50 = vsub.f32 %v2212_v48, %v376_v49 }
 0x2b8   :  { %387 = vperm.xlu1 %1944, %v377_v50  }
 0x333   :  { %v381_v51 = vpop.permute.xlu0 %380 }
 0x334   :  { %v383_v52 = vmul.f32 %v381_v51, %v273_v13  ;;  %v384_v53 = vmul.f32 %v381_v51, %v275_v15  ;;  %v394_v54 = vmul.f32 %v381_v51, %v344_v14  ;;  %v395_v55 = vmul.f32 %v381_v51, %v346_v18 }
 0x337   :  { %v388_v56 = vpop.permute.xlu1 %387 }
 0x338   :  { %v390_v57 = vadd.f32 %v388_v56, %v383_v52  ;;  %v396_v58 = vadd.f32 %v394_v54, %v388_v56  ;;  %v391_v61 = vadd.f32 %v388_v56, %v384_v53  ;;  %v397_v62 = vadd.f32 %v395_v55, %v388_v56 }
 0x33a   :  { %v392_v2 = vmax.f32 %v390_v57, 0.0  ;;  %v398_v3 = vmax.f32 %v396_v58, 0.0  ;;  %v393_v4 = vmax.f32 %v391_v61, 0.0  ;;  %v399_v6 = vmax.f32 %v397_v62, 0.0 }
 0x33c   :  { %464 = vmatprep.mubr.f32.mxu1 %v393_v4  ;;  %543 = vmatprep.mubr.f32.mxu0 %v399_v6  ;;  %v470_v9 = vadd.f32 %v393_v4, %v392_v2  ;;  %v549_v10 = vadd.f32 %v399_v6, %v398_v3 }
 0x33d   :  { %465 = vmatmul.mubr.f32.vlgmr.msra.gmra.mrb[2].mxu1 %v392_v2  ;;  %544 = vmatmul.mubr.f32.vlgmr.msra.gmra.mrb[4].mxu0 %v398_v3 }
 0x33e   :  { %471 = vadd.xlane.f32.xlu1 %v470_v9  ;;  %550 = vadd.xlane.f32.xlu0 %v549_v10 }
 0x33f   :  { %1846 = vmatpush3.bf16.msra.mxu1 %v2128_v5  ;;  %1852 = vmatpush3.bf16.msra.mxu0 %v2128_v5 }
 0x340   :  { %1847 = vmatprep.subr.bf16.mxu1 %v2047_v0  ;;  %1853 = vmatprep.subr.bf16.mxu0 %v2047_v0 }
 0x341   :  { %1770 = vmatprep.mubr.msk.f32.mxu1 %vm2048_vm0, %v2049_v1  ;;  %1781 = vmatprep.mubr.msk.f32.mxu0 %vm2048_vm0, %v2049_v1 }
 0x343   :  { %1849 = vmatpush3.bf16.msra.mxu1 %v2131_v7  ;;  %1855 = vmatpush3.bf16.msra.mxu0 %v2131_v7 }
 0x344   :  { %1857 = vmatprep.subr.bf16.mxu1 %v2143_v12  ;;  %1865 = vmatprep.subr.bf16.mxu0 %v2145_v16 }
 0x3cb   :  { %v472_v11 = vpop.xlane.xlu1 %471  ;;  %v551_v13 = vpop.xlane.xlu0 %550 }
 0x3cc   :  { %v473_v14 = vadd.f32 1e-12, %v472_v11  ;;  %v552_v15 = vadd.f32 1e-12, %v551_v13 }
 0x3ce   :  { %1949 = vrcp.f32 %v473_v14 }
 0x3cf   :  { %1951 = vrcp.f32 %v552_v15 }
 0x3d8   :  { %v1950_v18 = vpop.eup %1949 }
 0x3d9   :  { %v1952_v19 = vpop.eup %1951  ;;  %v475_v21 = vmul.f32 %v1950_v18, %v473_v14 }
 0x3da   :  { %v554_v22 = vmul.f32 %v1952_v19, %v552_v15 }
 0x3db   :  { %v476_v23 = vsub.f32 2.0, %v475_v21 }
 0x3dc   :  { %v555_v25 = vsub.f32 2.0, %v554_v22 }
 0x3dd   :  { %v477_v26 = vmul.f32 %v1950_v18, %v476_v23 }
 0x3de   :  { %v556_v27 = vmul.f32 %v1952_v19, %v555_v25 }
 0x410   :  { %v466_v30 = vpop.f32.mrb[2].mxu1  ;;  %v545_v31 = vpop.f32.mrb[4].mxu0 }
 0x411   :  { %v478_v35 = vmul.f32 %v477_v26, %v466_v30  ;;  %v557_v36 = vmul.f32 %v556_v27, %v545_v31  ;;  %v468_v37 = vpop.f32.mrb[3].mxu1  ;;  %v547_v38 = vpop.f32.mrb[5].mxu0 }
 0x413   :  { %v558_v39 = vmul.f32 0.1, %v478_v35  ;;  %v561_v40 = vmul.f32 0.1, %v557_v36 }
 0x415   :  { %v2228_v41 = vadd.f32 %v559_v34, %v558_v39  ;;  %v2230_v42 = vadd.f32 %v561_v40, %v559_v34 }
 0x417   :  { %1771 = vmatmul.mubr.msk.f32.vlgmr.msra.gmra.mrb[4].mxu1 %vm91_vm1, %v2228_v41  ;;  %1782 = vmatmul.mubr.msk.f32.vlgmr.msra.gmra.mrb[6].mxu0 %vm91_vm1, %v2230_v42 }
 0x418   :  { %1859 = vmatpush1.bf16.msra.mxu1 %v2147_v17  ;;  %1867 = vmatpush1.bf16.msra.mxu0 %v2150_v20 }
 0x419   :  { %1861 = vmatprep.subr.bf16.mxu1 %v2155_v24  ;;  %1869 = vmatprep.subr.bf16.mxu0 %v2157_v28 }
 0x41a   :  { %835 = vmatprep.mubr.f32.mxu1 %v2049_v1  ;;  %909 = vmatprep.mubr.f32.mxu0 %v2049_v1 }
 0x41c   :  { %1863 = vmatpush1.bf16.msra.mxu1 %v2159_v29  ;;  %1871 = vmatpush1.bf16.msra.mxu0 %v2162_v32 }
 0x41d   :  { %1873 = vmatprep.subr.bf16.mxu1 %v2143_v12  ;;  %1881 = vmatprep.subr.bf16.mxu0 %v2145_v16 }
 0x4ea   :  { %v632_v8 = vpop.f32.mrb[4].mxu1  ;;  %v705_v43 = vpop.f32.mrb[6].mxu0 }
 0x4eb   :  { %v633_v44 = vadd.f32 %v2172_v33, %v632_v8  ;;  %v706_v46 = vadd.f32 %v2172_v33, %v705_v43  ;;  %v1772_v47 = vpop.f32.mrb[5].mxu1  ;;  %v1783_v49 = vpop.f32.mrb[7].mxu0 }
 0x4ed   :  { %v709_v50 = vsel %vm91_vm1, %v633_v44, 0.0  ;;  %v726_v51 = vmul.f32 %v633_v44, %v633_v44  ;;  %v717_v52 = vsel %vm91_vm1, %v706_v46, 0.0  ;;  %v735_v53 = vmul.f32 %v706_v46, %v706_v46 }
 0x4ee   :  { %v710_v54 = vrot.slane %v709_v50, 4  ;;  %v718_v55 = vrot.slane %v717_v52, 4 }
 0x4ef   :  { %v727_v56 = vsel %vm91_vm1, %v726_v51, 0.0  ;;  %v736_v57 = vsel %vm91_vm1, %v735_v53, 0.0 }
 0x4f0   :  { %v711_v58 = vadd.f32 %v710_v54, %v709_v50  ;;  %v728_v61 = vrot.slane %v727_v56, 4  ;;  %v719_v62 = vadd.f32 %v718_v55, %v717_v52  ;;  %v737_v2 = vrot.slane %v736_v57, 4 }
 0x4f2   :  { %v712_v3 = vrot.slane %v711_v58, 2  ;;  %v729_v4 = vadd.f32 %v728_v61, %v727_v56  ;;  %v720_v6 = vrot.slane %v719_v62, 2  ;;  %v738_v9 = vadd.f32 %v737_v2, %v736_v57 }
 0x4f4   :  { %v713_v10 = vadd.f32 %v712_v3, %v711_v58  ;;  %v730_v11 = vrot.slane %v729_v4, 2  ;;  %v721_v13 = vadd.f32 %v720_v6, %v719_v62  ;;  %v739_v14 = vrot.slane %v738_v9, 2 }
 0x4f6   :  { %v714_v15 = vrot.slane %v713_v10, 1  ;;  %v731_v18 = vadd.f32 %v730_v11, %v729_v4  ;;  %v722_v19 = vrot.slane %v721_v13, 1  ;;  %v740_v21 = vadd.f32 %v739_v14, %v738_v9 }
 0x4f8   :  { %v715_v22 = vadd.f32 %v714_v15, %v713_v10  ;;  %v732_v23 = vrot.slane %v731_v18, 1  ;;  %v723_v25 = vadd.f32 %v722_v19, %v721_v13  ;;  %v741_v26 = vrot.slane %v740_v21, 1 }
 0x4fa   :  { %v733_v27 = vadd.f32 %v732_v23, %v731_v18  ;;  %v724_v30 = vadd.f32 %v723_v25, %v715_v22  ;;  %v742_v31 = vadd.f32 %v741_v26, %v740_v21 }
 0x4fc   :  { %v725_v34 = vmul.f32 0.0625, %v724_v30  ;;  %v743_v35 = vadd.f32 %v742_v31, %v733_v27 }
 0x4fe   :  { %v744_v36 = vmul.f32 0.0625, %v743_v35  ;;  %v745_v37 = vmul.f32 %v725_v34, %v725_v34 }
 0x500   :  { %v746_v38 = vsub.f32 %v744_v36, %v745_v37 }
 0x502   :  { %v747_v39 = vadd.f32 1e-05, %v746_v38 }
 0x504   :  { %1953 = vrsqrt.f32 %v747_v39 }
 0x50e   :  { %v1954_v40 = vpop.eup %1953 }
 0x50f   :  { %v749_v8 = vmul.f32 %v1954_v40, %v2180_v59 }
 0x511   :  { %v750_v43 = vmul.f32 %v749_v8, %v725_v34  ;;  %v755_v47 = vrot.slane %v749_v8, %v2182_v60 }
 0x513   :  { %v751_v49 = vsub.f32 %v2188_v63, %v750_v43  ;;  %v756_v50 = vmul.f32 %v755_v47, %v633_v44  ;;  %v765_v51 = vmul.f32 %v755_v47, %v706_v46 }
 0x515   :  { %v761_v52 = vrot.slane %v751_v49, %v2182_v60 }
 0x517   :  { %v763_v53 = vadd.f32 %v761_v52, %v756_v50  ;;  %v766_v54 = vadd.f32 %v765_v51, %v761_v52 }
 0x519   :  { %v764_v55 = vmax.f32 %v763_v53, 0.0  ;;  %v767_v56 = vmax.f32 %v766_v54, 0.0 }
 0x51b   :  { %1720 = vmatmul.mubr.msk.f32.vlgmr.msra.gmra.mrb[6].mxu1 %vm91_vm1, %v764_v55  ;;  %1721 = vmatmul.mubr.msk.f32.vlgmr.msra.gmra.mrb[8].mxu0 %vm91_vm1, %v767_v56 }
 0x51c   :  { %1875 = vmatpush1.bf16.xpose.msra.mxu1 %v2147_v17  ;;  %1883 = vmatpush1.bf16.xpose.msra.mxu0 %v2150_v20 }
 0x51d   :  { %1877 = vmatprep.subr.bf16.mxu1 %v2155_v24  ;;  %1885 = vmatprep.subr.bf16.mxu0 %v2157_v28 }
 0x524   :  { %1879 = vmatpush1.bf16.xpose.msra.mxu1 %v2159_v29  ;;  %1887 = vmatpush1.bf16.xpose.msra.mxu0 %v2162_v32 }
 0x525   :  { %1888 = vmatprep.subr.bf16.mxu1 %v2047_v0  ;;  %1894 = vmatprep.subr.bf16.mxu0 %v2047_v0 }
 0x5ee   :  { %v837_v44 = vpop.f32.mrb[6].mxu1  ;;  %v911_v46 = vpop.f32.mrb[8].mxu0 }
 0x5ef   :  { %v839_v57 = vpop.f32.mrb[7].mxu1  ;;  %v913_v58 = vpop.f32.mrb[9].mxu0  ;;  %v925_v61 = vmul.f32 %v837_v44, %v837_v44  ;;  %v931_v62 = vmul.f32 %v911_v46, %v911_v46 }
 0x5f0   :  { %v916_v2 = vadd.f32 %v839_v57, %v837_v44  ;;  %v920_v3 = vadd.f32 %v913_v58, %v911_v46  ;;  %v926_v4 = vmul.f32 %v839_v57, %v839_v57  ;;  %v932_v6 = vmul.f32 %v913_v58, %v913_v58 }
 0x5f2   :  { %917 = vadd.xlane.f32.xlu1 %v916_v2  ;;  %v927_v9 = vadd.f32 %v926_v4, %v925_v61  ;;  %v933_v10 = vadd.f32 %v932_v6, %v931_v62 }
 0x5f6   :  { %921 = vadd.xlane.f32.xlu1 %v920_v3 }
 0x5fa   :  { %928 = vadd.xlane.f32.xlu1 %v927_v9 }
 0x5fe   :  { %934 = vadd.xlane.f32.xlu1 %v933_v10 }
 0x67f   :  { %v918_v11 = vpop.xlane.xlu1 %917 }
 0x683   :  { %v922_v13 = vpop.xlane.xlu1 %921 }
 0x684   :  { %v923_v14 = vadd.f32 %v922_v13, %v918_v11 }
 0x686   :  { %v924_v18 = vmul.f32 0.001953125, %v923_v14  ;;  %v1126_v14 = vmul.f32 0.9, %v2228_v41 }
 0x687   :  { %v929_v15 = vpop.xlane.xlu1 %928 }
 0x688   :  { %v938_v22 = vmul.f32 %v924_v18, %v924_v18 }
 0x68b   :  { %v935_v19 = vpop.xlane.xlu1 %934 }
 0x68c   :  { %v936_v21 = vadd.f32 %v935_v19, %v929_v15  ;;  %v1129_v19 = vmul.f32 0.9, %v2230_v42 }
 0x68e   :  { %v937_v23 = vmul.f32 0.001953125, %v936_v21 }
 0x690   :  { %v939_v25 = vsub.f32 %v937_v23, %v938_v22 }
 0x692   :  { %v940_v26 = vadd.f32 1e-05, %v939_v25 }
 0x694   :  { %1955 = vrsqrt.f32 %v940_v26 }
 0x69e   :  { %v1956_v27 = vpop.eup %1955 }
 0x69f   :  { %v942_v30 = vmul.f32 %v1956_v27, %v2206_v45 }
 0x6a1   :  { %947 = vperm.xlu1 %1944, %v942_v30   ;;  %v943_v31 = vmul.f32 %v942_v30, %v924_v18 }
 0x6a3   :  { %v944_v34 = vsub.f32 %v2212_v48, %v943_v31 }
 0x6a5   :  { %954 = vperm.xlu0 %1943, %v944_v34  }
 0x720   :  { %v948_v35 = vpop.permute.xlu1 %947 }
 0x721   :  { %v950_v36 = vmul.f32 %v948_v35, %v837_v44  ;;  %v951_v37 = vmul.f32 %v948_v35, %v839_v57  ;;  %v961_v38 = vmul.f32 %v948_v35, %v911_v46  ;;  %v962_v39 = vmul.f32 %v948_v35, %v913_v58 }
 0x724   :  { %v955_v40 = vpop.permute.xlu0 %954 }
 0x725   :  { %v957_v8 = vadd.f32 %v955_v40, %v950_v36  ;;  %v963_v43 = vadd.f32 %v961_v38, %v955_v40  ;;  %v958_v47 = vadd.f32 %v955_v40, %v951_v37  ;;  %v964_v49 = vadd.f32 %v962_v39, %v955_v40 }
 0x727   :  { %v959_v50 = vmax.f32 %v957_v8, 0.0  ;;  %v965_v51 = vmax.f32 %v963_v43, 0.0  ;;  %v960_v52 = vmax.f32 %v958_v47, 0.0  ;;  %v966_v53 = vmax.f32 %v964_v49, 0.0 }
 0x729   :  { %1031 = vmatprep.mubr.f32.mxu1 %v960_v52  ;;  %1110 = vmatprep.mubr.f32.mxu0 %v966_v53  ;;  %v1037_v54 = vadd.f32 %v960_v52, %v959_v50  ;;  %v1116_v55 = vadd.f32 %v966_v53, %v965_v51 }
 0x72a   :  { %1032 = vmatmul.mubr.f32.vlgmr.msra.gmra.mrb[8].mxu1 %v959_v50  ;;  %1111 = vmatmul.mubr.f32.vlgmr.msra.gmra.mrb[10].mxu0 %v965_v51 }
 0x72b   :  { %1038 = vadd.xlane.f32.xlu1 %v1037_v54  ;;  %1117 = vadd.xlane.f32.xlu0 %v1116_v55 }
 0x72c   :  { %1890 = vmatpush3.bf16.msra.mxu1 %v2128_v5  ;;  %1896 = vmatpush3.bf16.msra.mxu0 %v2128_v5 }
 0x72d   :  { %1891 = vmatprep.subr.bf16.mxu1 %v2047_v0  ;;  %1897 = vmatprep.subr.bf16.mxu0 %v2047_v0 }
 0x72e   :  { %1792 = vmatprep.mubr.msk.f32.mxu1 %vm2048_vm0, %v2049_v1  ;;  %1803 = vmatprep.mubr.msk.f32.mxu0 %vm2048_vm0, %v2049_v1 }
 0x730   :  { %1893 = vmatpush3.bf16.msra.mxu1 %v2131_v7  ;;  %1899 = vmatpush3.bf16.msra.mxu0 %v2131_v7 }
 0x731   :  { %1901 = vmatprep.subr.bf16.mxu1 %v2143_v12  ;;  %1909 = vmatprep.subr.bf16.mxu0 %v2145_v16 }
 0x7b8   :  { %v1039_v56 = vpop.xlane.xlu1 %1038  ;;  %v1118_v5 = vpop.xlane.xlu0 %1117 }
 0x7b9   :  { %v1040_v44 = vadd.f32 1e-12, %v1039_v56  ;;  %v1119_v46 = vadd.f32 1e-12, %v1118_v5 }
 0x7bb   :  { %1957 = vrcp.f32 %v1040_v44 }
 0x7bc   :  { %1959 = vrcp.f32 %v1119_v46 }
 0x7c5   :  { %v1958_v0 = vpop.eup %1957 }
 0x7c6   :  { %v1960_v57 = vpop.eup %1959  ;;  %v1042_v58 = vmul.f32 %v1958_v0, %v1040_v44 }
 0x7c7   :  { %v1121_v61 = vmul.f32 %v1960_v57, %v1119_v46 }
 0x7c8   :  { %v1043_v62 = vsub.f32 2.0, %v1042_v58 }
 0x7c9   :  { %v1122_v2 = vsub.f32 2.0, %v1121_v61 }
 0x7ca   :  { %v1044_v3 = vmul.f32 %v1958_v0, %v1043_v62 }
 0x7cb   :  { %v1123_v4 = vmul.f32 %v1960_v57, %v1122_v2 }
 0x7fd   :  { %v1033_v6 = vpop.f32.mrb[8].mxu1  ;;  %v1112_v7 = vpop.f32.mrb[10].mxu0 }
 0x7fe   :  { %v1045_v9 = vmul.f32 %v1044_v3, %v1033_v6  ;;  %v1124_v10 = vmul.f32 %v1123_v4, %v1112_v7  ;;  %v1035_v11 = vpop.f32.mrb[9].mxu1  ;;  %v1114_v13 = vpop.f32.mrb[11].mxu0 }
 0x800   :  { %v1125_v15 = vmul.f32 0.1, %v1045_v9  ;;  %v1128_v18 = vmul.f32 0.1, %v1124_v10 }
 0x802   :  { %v1127_v21 = vadd.f32 %v1126_v14, %v1125_v15  ;;  %v1130_v22 = vadd.f32 %v1129_v19, %v1128_v18 }
 0x804   :  { %1793 = vmatmul.mubr.msk.f32.vlgmr.msra.gmra.mrb[10].mxu1 %vm91_vm1, %v1127_v21  ;;  %1804 = vmatmul.mubr.msk.f32.vlgmr.msra.gmra.mrb[12].mxu0 %vm91_vm1, %v1130_v22 }
 0x805   :  { %1903 = vmatpush1.bf16.msra.mxu1 %v2147_v17  ;;  %1911 = vmatpush1.bf16.msra.mxu0 %v2150_v20 }
 0x806   :  { %1905 = vmatprep.subr.bf16.mxu1 %v2155_v24  ;;  %1913 = vmatprep.subr.bf16.mxu0 %v2157_v28 }
 0x807   :  { %1403 = vmatprep.mubr.f32.mxu1 %v2049_v1  ;;  %1477 = vmatprep.mubr.f32.mxu0 %v2049_v1 }
 0x809   :  { %1907 = vmatpush1.bf16.msra.mxu1 %v2159_v29  ;;  %1915 = vmatpush1.bf16.msra.mxu0 %v2162_v32 }
 0x80a   :  { %1917 = vmatprep.subr.bf16.mxu1 %v2143_v12  ;;  %1925 = vmatprep.subr.bf16.mxu0 %v2145_v16 }
 0x8d7   :  { %v1200_v41 = vpop.f32.mrb[10].mxu1  ;;  %v1273_v42 = vpop.f32.mrb[12].mxu0 }
 0x8d8   :  { %v1201_v23 = vadd.f32 %v2172_v33, %v1200_v41  ;;  %v1274_v25 = vadd.f32 %v2172_v33, %v1273_v42  ;;  %v1794_v26 = vpop.f32.mrb[11].mxu1  ;;  %v1805_v27 = vpop.f32.mrb[13].mxu0 }
 0x8da   :  { %v1277_v30 = vsel %vm91_vm1, %v1201_v23, 0.0  ;;  %v1294_v31 = vmul.f32 %v1201_v23, %v1201_v23  ;;  %v1285_v1 = vsel %vm91_vm1, %v1274_v25, 0.0  ;;  %v1303_v34 = vmul.f32 %v1274_v25, %v1274_v25 }
 0x8db   :  { %v1278_v35 = vrot.slane %v1277_v30, 4  ;;  %v1286_v36 = vrot.slane %v1285_v1, 4 }
 0x8dc   :  { %v1295_v12 = vsel %vm91_vm1, %v1294_v31, 0.0  ;;  %v1304_v16 = vsel %vm91_vm1, %v1303_v34, 0.0 }
 0x8dd   :  { %v1279_v37 = vadd.f32 %v1278_v35, %v1277_v30  ;;  %v1296_v38 = vrot.slane %v1295_v12, 4  ;;  %v1287_v39 = vadd.f32 %v1286_v36, %v1285_v1  ;;  %v1305_v40 = vrot.slane %v1304_v16, 4 }
 0x8df   :  { %v1280_v8 = vrot.slane %v1279_v37, 2  ;;  %v1297_v33 = vadd.f32 %v1296_v38, %v1295_v12  ;;  %v1288_v43 = vrot.slane %v1287_v39, 2  ;;  %v1306_v47 = vadd.f32 %v1305_v40, %v1304_v16 }
 0x8e1   :  { %v1281_v49 = vadd.f32 %v1280_v8, %v1279_v37  ;;  %v1298_v50 = vrot.slane %v1297_v33, 2  ;;  %v1289_v51 = vadd.f32 %v1288_v43, %v1287_v39  ;;  %v1307_v52 = vrot.slane %v1306_v47, 2 }
 0x8e3   :  { %v1282_v53 = vrot.slane %v1281_v49, 1  ;;  %v1299_v54 = vadd.f32 %v1298_v50, %v1297_v33  ;;  %v1290_v55 = vrot.slane %v1289_v51, 1  ;;  %v1308_v56 = vadd.f32 %v1307_v52, %v1306_v47 }
 0x8e5   :  { %v1283_v5 = vadd.f32 %v1282_v53, %v1281_v49  ;;  %v1300_v44 = vrot.slane %v1299_v54, 1  ;;  %v1291_v46 = vadd.f32 %v1290_v55, %v1289_v51  ;;  %v1309_v0 = vrot.slane %v1308_v56, 1 }
 0x8e7   :  { %v1301_v57 = vadd.f32 %v1300_v44, %v1299_v54  ;;  %v1292_v58 = vadd.f32 %v1291_v46, %v1283_v5  ;;  %v1310_v61 = vadd.f32 %v1309_v0, %v1308_v56 }
 0x8e9   :  { %v1293_v62 = vmul.f32 0.0625, %v1292_v58  ;;  %v1311_v2 = vadd.f32 %v1310_v61, %v1301_v57 }
 0x8eb   :  { %v1312_v3 = vmul.f32 0.0625, %v1311_v2  ;;  %v1313_v4 = vmul.f32 %v1293_v62, %v1293_v62 }
 0x8ed   :  { %v1314_v6 = vsub.f32 %v1312_v3, %v1313_v4 }
 0x8ef   :  { %v1315_v7 = vadd.f32 1e-05, %v1314_v6 }
 0x8f1   :  { %1961 = vrsqrt.f32 %v1315_v7 }
 0x8fb   :  { %v1962_v9 = vpop.eup %1961 }
 0x8fc   :  { %v1317_v10 = vmul.f32 %v1962_v9, %v2180_v59 }
 0x8fe   :  { %v1318_v11 = vmul.f32 %v1317_v10, %v1293_v62  ;;  %v1323_v13 = vrot.slane %v1317_v10, %v2182_v60 }
 0x900   :  { %v1319_v14 = vsub.f32 %v2188_v63, %v1318_v11  ;;  %v1324_v15 = vmul.f32 %v1323_v13, %v1201_v23  ;;  %v1333_v18 = vmul.f32 %v1323_v13, %v1274_v25 }
 0x902   :  { %v1329_v19 = vrot.slane %v1319_v14, %v2182_v60 }
 0x904   :  { %v1331_v21 = vadd.f32 %v1329_v19, %v1324_v15  ;;  %v1334_v22 = vadd.f32 %v1333_v18, %v1329_v19 }
 0x906   :  { %v1332_v41 = vmax.f32 %v1331_v21, 0.0  ;;  %v1335_v42 = vmax.f32 %v1334_v22, 0.0 }
 0x908   :  { %1724 = vmatmul.mubr.msk.f32.vlgmr.msra.gmra.mrb[12].mxu1 %vm91_vm1, %v1332_v41  ;;  %1725 = vmatmul.mubr.msk.f32.vlgmr.msra.gmra.mrb[14].mxu0 %vm91_vm1, %v1335_v42 }
 0x909   :  { %1919 = vmatpush1.bf16.xpose.msra.mxu1 %v2147_v17  ;;  %1927 = vmatpush1.bf16.xpose.msra.mxu0 %v2150_v20 }
 0x90a   :  { %1921 = vmatprep.subr.bf16.mxu1 %v2155_v24  ;;  %1929 = vmatprep.subr.bf16.mxu0 %v2157_v28 }
 0x911   :  { %1923 = vmatpush1.bf16.xpose.msra.mxu1 %v2159_v29  ;;  %1931 = vmatpush1.bf16.xpose.msra.mxu0 %v2162_v32 }
 0x9db   :  { %v1405_v59 = vpop.f32.mrb[12].mxu1  ;;  %v1479_v60 = vpop.f32.mrb[14].mxu0 }
 0x9dc   :  { %v1407_v63 = vpop.f32.mrb[13].mxu1  ;;  %v1481_v23 = vpop.f32.mrb[15].mxu0  ;;  %v1493_v25 = vmul.f32 %v1405_v59, %v1405_v59  ;;  %v1499_v26 = vmul.f32 %v1479_v60, %v1479_v60 }
 0x9dd   :  { %v1484_v27 = vadd.f32 %v1407_v63, %v1405_v59  ;;  %v1494_v30 = vmul.f32 %v1407_v63, %v1407_v63  ;;  %v1488_v31 = vadd.f32 %v1481_v23, %v1479_v60  ;;  %v1500_v17 = vmul.f32 %v1481_v23, %v1481_v23 }
 0x9df   :  { %1485 = vadd.xlane.f32.xlu1 %v1484_v27  ;;  %v1495_v20 = vadd.f32 %v1494_v30, %v1493_v25  ;;  %v1501_v1 = vadd.f32 %v1500_v17, %v1499_v26 }
 0x9e1   :  { %1496 = vadd.xlane.f32.xlu0 %v1495_v20 }
 0x9e3   :  { %1489 = vadd.xlane.f32.xlu1 %v1488_v31 }
 0x9e7   :  { %1502 = vadd.xlane.f32.xlu1 %v1501_v1 }
 0xa6c   :  { %v1486_v24 = vpop.xlane.xlu1 %1485 }
 0xa6e   :  { %v1497_v34 = vpop.xlane.xlu0 %1496 }
 0xa70   :  { %v1490_v28 = vpop.xlane.xlu1 %1489 }
 0xa71   :  { %v1491_v29 = vadd.f32 %v1490_v28, %v1486_v24 }
 0xa73   :  { %v1492_v32 = vmul.f32 0.001953125, %v1491_v29 }
 0xa74   :  { %v1503_v35 = vpop.xlane.xlu1 %1502 }
 0xa75   :  { %v1504_v36 = vadd.f32 %v1503_v35, %v1497_v34  ;;  %v1506_v12 = vmul.f32 %v1492_v32, %v1492_v32 }
 0xa77   :  { %v1505_v16 = vmul.f32 0.001953125, %v1504_v36 }
 0xa79   :  { %v1507_v37 = vsub.f32 %v1505_v16, %v1506_v12 }
 0xa7b   :  { %v1508_v38 = vadd.f32 1e-05, %v1507_v37 }
 0xa7d   :  { %1963 = vrsqrt.f32 %v1508_v38 }
 0xa87   :  { %v1964_v39 = vpop.eup %1963 }
 0xa88   :  { %v1510_v40 = vmul.f32 %v1964_v39, %v2206_v45 }
 0xa8a   :  { %1515 = vperm.xlu0 %1943, %v1510_v40   ;;  %v1511_v8 = vmul.f32 %v1510_v40, %v1492_v32 }
 0xa8c   :  { %v1512_v33 = vsub.f32 %v2212_v48, %v1511_v8 }
 0xa8e   :  { %1522 = vperm.xlu1 %1944, %v1512_v33  }
 0xb09   :  { %v1516_v43 = vpop.permute.xlu0 %1515 }
 0xb0a   :  { %v1518_v47 = vmul.f32 %v1516_v43, %v1405_v59  ;;  %v1519_v49 = vmul.f32 %v1516_v43, %v1407_v63  ;;  %v1529_v50 = vmul.f32 %v1516_v43, %v1479_v60  ;;  %v1530_v51 = vmul.f32 %v1516_v43, %v1481_v23 }
 0xb0d   :  { %v1523_v52 = vpop.permute.xlu1 %1522 }
 0xb0e   :  { %v1525_v53 = vadd.f32 %v1523_v52, %v1518_v47  ;;  %v1531_v54 = vadd.f32 %v1529_v50, %v1523_v52  ;;  %v1526_v55 = vadd.f32 %v1523_v52, %v1519_v49  ;;  %v1532_v56 = vadd.f32 %v1530_v51, %v1523_v52 }
 0xb10   :  { %v1527_v5 = vmax.f32 %v1525_v53, 0.0  ;;  %v1533_v44 = vmax.f32 %v1531_v54, 0.0  ;;  %v1528_v46 = vmax.f32 %v1526_v55, 0.0  ;;  %v1534_v0 = vmax.f32 %v1532_v56, 0.0 }
 0xb12   :  { %1599 = vmatprep.mubr.f32.mxu1 %v1528_v46  ;;  %1678 = vmatprep.mubr.f32.mxu0 %v1534_v0  ;;  %v1605_v45 = vadd.f32 %v1528_v46, %v1527_v5  ;;  %v1684_v57 = vadd.f32 %v1534_v0, %v1533_v44 }
 0xb13   :  { %1600 = vmatmul.mubr.f32.vlgmr.msra.gmra.mrb[14].mxu1 %v1527_v5  ;;  %1679 = vmatmul.mubr.f32.vlgmr.msra.gmra.mrb[16].mxu0 %v1533_v44 }
 0xb14   :  { %1606 = vadd.xlane.f32.xlu1 %v1605_v45  ;;  %1685 = vadd.xlane.f32.xlu0 %v1684_v57 }
 0xba1   :  { %v1607_v48 = vpop.xlane.xlu1 %1606  ;;  %v1686_v58 = vpop.xlane.xlu0 %1685 }
 0xba2   :  { %v1608_v61 = vadd.f32 1e-12, %v1607_v48  ;;  %v1687_v62 = vadd.f32 1e-12, %v1686_v58 }
 0xba4   :  { %1965 = vrcp.f32 %v1608_v61 }
 0xba5   :  { %1967 = vrcp.f32 %v1687_v62 }
 0xbae   :  { %v1966_v2 = vpop.eup %1965 }
 0xbaf   :  { %v1968_v3 = vpop.eup %1967  ;;  %v1610_v4 = vmul.f32 %v1966_v2, %v1608_v61 }
 0xbb0   :  { %v1689_v6 = vmul.f32 %v1968_v3, %v1687_v62 }
 0xbb1   :  { %v1611_v7 = vsub.f32 2.0, %v1610_v4 }
 0xbb2   :  { %v1690_v9 = vsub.f32 2.0, %v1689_v6 }
 0xbb3   :  { %v1612_v10 = vmul.f32 %v1966_v2, %v1611_v7 }
 0xbb4   :  { %v1691_v11 = vmul.f32 %v1968_v3, %v1690_v9 }
 0xbe6   :  { %v1601_v13 = vpop.f32.mrb[14].mxu1  ;;  %v1680_v14 = vpop.f32.mrb[16].mxu0 }
 0xbe7   :  { %v1613_v15 = vmul.f32 %v1612_v10, %v1601_v13  ;;  %v1692_v18 = vmul.f32 %v1691_v11, %v1680_v14  ;;  %v1603_v19 = vpop.f32.mrb[15].mxu1  ;;  %v1682_v21 = vpop.f32.mrb[17].mxu0 }
 0xbe9   :  { %1693 = vst.msk [vmem:[#allocation7] sm:$0xff] %vm91_vm1, %v1613_v15  ;;  %1695 = vst.msk [vmem:[#allocation7 + $0x8] sm:$0xff] %vm91_vm1, %v1692_v18 }
 0xbea   :  { %2024 = shalt.err (!%p2021_p6)
}
 0xbeb   :  { %s2025_s20 = scalar_lea.hbm %s2339_s8, 256 }
 0xbec   :  { %p2026_p7 = scmp.ne.s32.totalorder %s2339_s8, %s2025_s20  ;;  %p2029_p8 = scmp.lt.u32.totalorder %s2025_s20, %s2339_s8 }
 0xbee   :  { %p2031_p9 = pnand %p2029_p8, %p2026_p7 }
 0xbf0   :  { %2034 = shalt.err (!%p2031_p9)
}
 0xbf1   :  { %1707 = dma.vmem_to_hbm [thread:$0]  %s1702_s7, 256, %s2339_s8, [#allocation4], %s2045_s0, %s2045_s0, %s2046_s28  }
 0xbf2   :  { %2039 = dma.done.wait [#allocation4], 256  }
 0xbf3   :  { %2040 = vsyncadd [#allocation4], 4294967040 }
 0xbf4   :  { %1711 = vsyncpa [#allocation3], 1 }
 0xbf5   :  { %1712 = vsyncpa [#allocation6], 1 }
 0xbf6   :  { %1713 = vsyncpa [#allocation4], 1 }

</bundles_post_ra>
